<compile_context>
chip_gen: v5e
topology: v5e:2x2
jax: 0.10.0
libtpu: 0.0.40
codegen_flags: <defaults>
</compile_context>

<pallas_src>
import jax
import jax.numpy as jnp
from jax.experimental import pallas as pl
from jax.experimental.pallas import tpu as pltpu

LN_EPS = 1e-5


def _layer_norm(x, gamma, beta):
    mu = jnp.mean(x, axis=-1, keepdims=True)
    var = jnp.mean((x - mu) ** 2, axis=-1, keepdims=True)
    return (x - mu) * jax.lax.rsqrt(var + LN_EPS) * gamma + beta


def context_encoder_kernel(x_ref, pos_ref, wq_ref, wkv_ref, wo_ref, w1_ref, w2_ref,
                           hw1_ref, hw2_ref, bias_ref, out_ref):
    f32 = jnp.float32
    S = x_ref.shape[0]
    D = wq_ref.shape[0]
    F = w1_ref.shape[-1]
    mm = wq_ref.dtype                       # matmul input dtype (f32, or bf16 on v6e/v7x)
    mid = S // 2

    bias = bias_ref[...]                    # (11, W) f32 packed bias / LN slab
    bq = bias[0:1, :D]
    bkv = bias[1:2, :2 * D]
    bo = bias[2:3, :D]
    ln1_g = bias[3:4, :D]
    ln1_b = bias[4:5, :D]
    b1 = bias[5:6, :F]
    b2 = bias[6:7, :D]
    ln2_g = bias[7:8, :D]
    ln2_b = bias[8:9, :D]
    hb1 = bias[9:10, :2 * D]
    hb2 = bias[10:11, :2 * D]

    # TODO(synk): TransformerEncoder internals are not given in the source snippet;
    # assumed: learned positional embedding + standard post-norm (layer_norm_first=False)
    # single-head encoder layer with ReLU FFN, dropout disabled (inference semantics).
    h = [x_ref[p] + pos_ref[p] for p in range(S)]       # each (TB, D) f32

    # Only the middle token's encoder output feeds the heads, so:
    #   Q only for the middle position; K,V (fused) for every position.
    q = jnp.dot(h[mid].astype(mm), wq_ref[...], preferred_element_type=f32) + bq
    kv = [jnp.dot(h[p].astype(mm), wkv_ref[...], preferred_element_type=f32) + bkv
          for p in range(S)]
    ks = [kv[p][:, :D] for p in range(S)]
    vs = [kv[p][:, D:] for p in range(S)]

    # Attention of the middle query over its own S keys: S per-row dot products
    # (VPU multiply + cross-lane reduce) -- no N x N matmul, no mask buffer.
    scale = 1.0 / jnp.sqrt(jnp.float32(D))
    s = [jnp.sum(q * ks[p], axis=-1, keepdims=True) * scale for p in range(S)]  # (TB, 1)
    m = s[0]
    for p in range(1, S):
        m = jnp.maximum(m, s[p])
    e = [jnp.exp(s[p] - m) for p in range(S)]
    denom = e[0]
    for p in range(1, S):
        denom = denom + e[p]
    acc = e[0] * vs[0]
    for p in range(1, S):
        acc = acc + e[p] * vs[p]
    attn = acc * pl.reciprocal(denom, approx=True)                              # (TB, D)

    attn = jnp.dot(attn.astype(mm), wo_ref[...], preferred_element_type=f32) + bo
    hm = _layer_norm(h[mid] + attn, ln1_g, ln1_b)

    # Feed-forward (middle rows only).
    ff = jnp.maximum(
        jnp.dot(hm.astype(mm), w1_ref[...], preferred_element_type=f32) + b1, 0.0)
    ff = jnp.dot(ff.astype(mm), w2_ref[...], preferred_element_type=f32) + b2
    hm = _layer_norm(hm + ff, ln2_g, ln2_b)

    # Fused NCE + seq heads: layer-1 weights concatenated to (D, 2D); layer-2 is a
    # block-diagonal (2D, 2D) slab => both heads from one lane-dense matmul.
    h1 = jnp.maximum(
        jnp.dot(hm.astype(mm), hw1_ref[...], preferred_element_type=f32) + hb1, 0.0)
    out = jnp.dot(h1.astype(mm), hw2_ref[...], preferred_element_type=f32) + hb2
    out_ref[...] = out                                  # (TB, 2D): [nce | seq, 0-pad]


def _round_up(n, m):
    return -(-n // m) * m


def _pack_weights(params, dtype):
    """Fuse the 26 original parameter arrays into a few slabs."""
    D = params["wq"].shape[0]
    F = params["w1"].shape[1]
    W = max(2 * D, F)

    wkv = jnp.concatenate([params["wk"], params["wv"]], axis=1)                 # (D, 2D)
    hw1 = jnp.concatenate([params["nce_w1"], params["seq_w1"]], axis=1)         # (D, 2D)
    seq_w2_pad = jnp.pad(params["seq_w2"], ((0, 0), (0, D - params["seq_w2"].shape[1])))
    zero_dd = jnp.zeros((D, D), jnp.float32)
    hw2 = jnp.concatenate([
        jnp.concatenate([params["nce_w2"], zero_dd], axis=1),
        jnp.concatenate([zero_dd, seq_w2_pad], axis=1)], axis=0)                # (2D, 2D)

    def row(v):
        v = v.reshape(1, -1).astype(jnp.float32)
        return jnp.pad(v, ((0, 0), (0, W - v.shape[1])))

    seq_b2_pad = jnp.pad(params["seq_b2"], ((0, 0), (0, D - params["seq_b2"].shape[1])))
    bias = jnp.concatenate([
        row(params["bq"]),
        row(jnp.concatenate([params["bk"], params["bv"]], axis=1)),
        row(params["bo"]),
        row(params["ln1_g"]), row(params["ln1_b"]),
        row(params["b1"]), row(params["b2"]),
        row(params["ln2_g"]), row(params["ln2_b"]),
        row(jnp.concatenate([params["nce_b1"], params["seq_b1"]], axis=1)),
        row(jnp.concatenate([params["nce_b2"], seq_b2_pad], axis=1)),
    ], axis=0)                                                                   # (11, W) f32

    cast = lambda a: a.astype(dtype)
    return (cast(params["wq"]), cast(wkv), cast(params["wo"]),
            cast(params["w1"]), cast(params["w2"]), cast(hw1), cast(hw2), bias)


def context_encoder(x, params, *, block_batch=None, matmul_dtype=jnp.float32):
    """Pallas forward. x: (B, S, D) f32. Returns (nce_out (B,D), seq_out (B,2)).

    matmul_dtype=jnp.bfloat16 uses bf16 MXU inputs with f32 accumulation
    (recommended on v6e/v7x); the default f32 is the safe v5e setting.
    """
    B, S, D = x.shape

    # Batch blocking: 256 examples per grid step keeps every matmul row count
    # >=128 (fills v5e/v6e/v7x MXUs) while staying far below the scoped-VMEM
    # default even with double-buffered inputs (a 256-example block at D=128 is
    # well under 2 MiB of x + <1 MiB of weights).
    if block_batch is None:
        block_batch = 256
    TB = _round_up(min(B, block_batch), 8)          # (8,128)-aligned blocks
    Bp = _round_up(B, TB)

    xs = jnp.transpose(x.astype(jnp.float32), (1, 0, 2))        # (S, B, D) position-major
    if Bp != B:
        xs = jnp.concatenate([xs, jnp.zeros((S, Bp - B, D), jnp.float32)], axis=1)

    wq, wkv, wo, w1, w2, hw1, hw2, bias = _pack_weights(params, matmul_dtype)
    pos = params["pos"].astype(jnp.float32).reshape(S, 1, D)

    consts = (pos, wq, wkv, wo, w1, w2, hw1, hw2, bias)

    def const_spec(a):
        nd = a.ndim
        return pl.BlockSpec(a.shape, lambda b, _nd=nd: (0,) * _nd)

    out = pl.pallas_call(
        context_encoder_kernel,
        grid=(Bp // TB,),
        in_specs=[pl.BlockSpec((S, TB, D), lambda b: (0, b, 0))]
                 + [const_spec(a) for a in consts],
        out_specs=pl.BlockSpec((TB, 2 * D), lambda b: (b, 0)),
        out_shape=jax.ShapeDtypeStruct((Bp, 2 * D), jnp.float32),
        compiler_params=pltpu.CompilerParams(dimension_semantics=("parallel",)),
    )(xs, *consts)

    nce_out = out[:B, :D]
    seq_out = out[:B, D:D + 2]
    return nce_out, seq_out


def init_params(key, seq_len=3, feature_dim=128):
    D = feature_dim
    F = D // 2 * 3                                   # encoder_ffn_embed_dim
    ks = jax.random.split(key, 12)

    def w(k, shape, scale=0.02):
        return (scale * jax.random.normal(k, shape)).astype(jnp.float32)

    z = lambda shape: jnp.zeros(shape, jnp.float32)
    o = lambda shape: jnp.ones(shape, jnp.float32)

    return {
        "pos":    w(ks[0], (seq_len, D)),
        "wq":     w(ks[1], (D, D)), "bq": z((1, D)),
        "wk":     w(ks[2], (D, D)), "bk": z((1, D)),
        "wv":     w(ks[3], (D, D)), "bv": z((1, D)),
        "wo":     w(ks[4], (D, D)), "bo": z((1, D)),
        "ln1_g":  o((1, D)), "ln1_b": z((1, D)),
        "w1":     w(ks[5], (D, F)), "b1": z((1, F)),
        "w2":     w(ks[6], (F, D)), "b2": z((1, D)),
        "ln2_g":  o((1, D)), "ln2_b": z((1, D)),
        "nce_w1": w(ks[7], (D, D)), "nce_b1": z((1, D)),
        "nce_w2": w(ks[8], (D, D)), "nce_b2": z((1, D)),
        "seq_w1": w(ks[9], (D, D)), "seq_b1": z((1, D)),
        "seq_w2": w(ks[10], (D, 2)), "seq_b2": z((1, 2)),
    }


def reference_forward(x, prm):
    """Pure-JAX reference mirroring the kernel semantics."""
    B, S, D = x.shape
    h = x + prm["pos"][None]
    q = h @ prm["wq"] + prm["bq"]
    k = h @ prm["wk"] + prm["bk"]
    v = h @ prm["wv"] + prm["bv"]
    scores = jnp.einsum("bqd,bkd->bqk", q, k) / jnp.sqrt(jnp.float32(D))
    a = jax.nn.softmax(scores, axis=-1)
    attn = jnp.einsum("bqk,bkd->bqd", a, v) @ prm["wo"] + prm["bo"]
    h = _layer_norm(h + attn, prm["ln1_g"], prm["ln1_b"])
    ff = jax.nn.relu(h @ prm["w1"] + prm["b1"]) @ prm["w2"] + prm["b2"]
    h = _layer_norm(h + ff, prm["ln2_g"], prm["ln2_b"])
    mid = h[:, S // 2, :]
    nce = jax.nn.relu(mid @ prm["nce_w1"] + prm["nce_b1"]) @ prm["nce_w2"] + prm["nce_b2"]
    seq = jax.nn.relu(mid @ prm["seq_w1"] + prm["seq_b1"]) @ prm["seq_w2"] + prm["seq_b2"]
    return nce, seq


if __name__ == "__main__":
    key = jax.random.PRNGKey(0)
    kx, kp = jax.random.split(key)

    B, S, D = 8, 3, 128          # small shapes; seq_len=3, feature_dim=128 (module defaults)
    x = jax.random.normal(kx, (B, S, D), dtype=jnp.float32)
    params = init_params(kp, seq_len=S, feature_dim=D)

    ref_nce, ref_seq = reference_forward(x, params)

    # f32 matmul path (v5e-friendly default).
    nce_out, seq_out = context_encoder(x, params)
    jax.block_until_ready((nce_out, seq_out))
    assert nce_out.shape == (B, D) and seq_out.shape == (B, 2)
    # approx-reciprocal softmax denominator -> tolerance slightly looser than 1e-4
    assert jnp.allclose(nce_out, ref_nce, rtol=2e-3, atol=2e-3)
    assert jnp.allclose(seq_out, ref_seq, rtol=2e-3, atol=2e-3)

    # bf16 MXU-input path (v6e / v7x tuning): f32 accumulation, loose tolerance.
    nce_bf, seq_bf = context_encoder(x, params, matmul_dtype=jnp.bfloat16)
    jax.block_until_ready((nce_bf, seq_bf))
    assert jnp.all(jnp.isfinite(nce_bf)) and jnp.all(jnp.isfinite(seq_bf))
    assert jnp.allclose(nce_bf, ref_nce, rtol=1e-1, atol=1e-1)
    assert jnp.allclose(seq_bf, ref_seq, rtol=1e-1, atol=1e-1)

    print("KERNEL_OK")
</pallas_src>

<mosaic_0001>
module attributes {stable_mosaic.version = 11 : i64} {
  func.func @context_encoder_kernel(%arg0: i32, %arg1: memref<3x8x128xf32, #tpu.memory_space<vmem>>, %arg2: memref<3x1x128xf32, #tpu.memory_space<vmem>>, %arg3: memref<128x128xf32, #tpu.memory_space<vmem>>, %arg4: memref<128x256xf32, #tpu.memory_space<vmem>>, %arg5: memref<128x128xf32, #tpu.memory_space<vmem>>, %arg6: memref<128x192xf32, #tpu.memory_space<vmem>>, %arg7: memref<192x128xf32, #tpu.memory_space<vmem>>, %arg8: memref<128x256xf32, #tpu.memory_space<vmem>>, %arg9: memref<256x256xf32, #tpu.memory_space<vmem>>, %arg10: memref<11x256xf32, #tpu.memory_space<vmem>>, %arg11: memref<8x256xf32, #tpu.memory_space<vmem>>) attributes {dimension_semantics = [#tpu.dimension_semantics<parallel>], iteration_bounds = array<i64: 1>, scalar_prefetch = 0 : i64, scratch_operands = 0 : i64, tpu.core_type = #tpu.core_type<tc>, window_params = [{transform_indices = @transform_0, window_bounds = array<i64: 3, 8, 128>}, {pipeline_mode = #tpu.pipeline_mode<synchronous>, transform_indices = @transform_1, window_bounds = array<i64: 3, 1, 128>}, {pipeline_mode = #tpu.pipeline_mode<synchronous>, transform_indices = @transform_2, window_bounds = array<i64: 128, 128>}, {pipeline_mode = #tpu.pipeline_mode<synchronous>, transform_indices = @transform_3, window_bounds = array<i64: 128, 256>}, {pipeline_mode = #tpu.pipeline_mode<synchronous>, transform_indices = @transform_4, window_bounds = array<i64: 128, 128>}, {pipeline_mode = #tpu.pipeline_mode<synchronous>, transform_indices = @transform_5, window_bounds = array<i64: 128, 192>}, {pipeline_mode = #tpu.pipeline_mode<synchronous>, transform_indices = @transform_6, window_bounds = array<i64: 192, 128>}, {pipeline_mode = #tpu.pipeline_mode<synchronous>, transform_indices = @transform_7, window_bounds = array<i64: 128, 256>}, {pipeline_mode = #tpu.pipeline_mode<synchronous>, transform_indices = @transform_8, window_bounds = array<i64: 256, 256>}, {pipeline_mode = #tpu.pipeline_mode<synchronous>, transform_indices = @transform_9, window_bounds = array<i64: 11, 256>}, {transform_indices = @transform_10, window_bounds = array<i64: 8, 256>}]} {
    %c0 = arith.constant 0 : index
    %c0_0 = arith.constant 0 : index
    %0 = vector.load %arg10[%c0, %c0_0] : memref<11x256xf32, #tpu.memory_space<vmem>>, vector<11x256xf32>
    %1 = vector.extract_strided_slice %0 {offsets = [0, 0], sizes = [1, 128], strides = [1, 1]} : vector<11x256xf32> to vector<1x128xf32>
    %2 = vector.extract_strided_slice %0 {offsets = [1, 0], sizes = [1, 256], strides = [1, 1]} : vector<11x256xf32> to vector<1x256xf32>
    %3 = vector.extract_strided_slice %0 {offsets = [2, 0], sizes = [1, 128], strides = [1, 1]} : vector<11x256xf32> to vector<1x128xf32>
    %4 = vector.extract_strided_slice %0 {offsets = [3, 0], sizes = [1, 128], strides = [1, 1]} : vector<11x256xf32> to vector<1x128xf32>
    %5 = vector.extract_strided_slice %0 {offsets = [4, 0], sizes = [1, 128], strides = [1, 1]} : vector<11x256xf32> to vector<1x128xf32>
    %6 = vector.extract_strided_slice %0 {offsets = [5, 0], sizes = [1, 192], strides = [1, 1]} : vector<11x256xf32> to vector<1x192xf32>
    %7 = vector.extract_strided_slice %0 {offsets = [6, 0], sizes = [1, 128], strides = [1, 1]} : vector<11x256xf32> to vector<1x128xf32>
    %8 = vector.extract_strided_slice %0 {offsets = [7, 0], sizes = [1, 128], strides = [1, 1]} : vector<11x256xf32> to vector<1x128xf32>
    %9 = vector.extract_strided_slice %0 {offsets = [8, 0], sizes = [1, 128], strides = [1, 1]} : vector<11x256xf32> to vector<1x128xf32>
    %10 = vector.extract_strided_slice %0 {offsets = [9, 0], sizes = [1, 256], strides = [1, 1]} : vector<11x256xf32> to vector<1x256xf32>
    %11 = vector.extract_strided_slice %0 {offsets = [10, 0], sizes = [1, 256], strides = [1, 1]} : vector<11x256xf32> to vector<1x256xf32>
    %c0_1 = arith.constant 0 : index
    %c0_2 = arith.constant 0 : index
    %c0_3 = arith.constant 0 : index
    %12 = vector.load %arg1[%c0_1, %c0_2, %c0_3] : memref<3x8x128xf32, #tpu.memory_space<vmem>>, vector<1x8x128xf32>
    %13 = vector.shape_cast %12 : vector<1x8x128xf32> to vector<8x128xf32>
    %c0_4 = arith.constant 0 : index
    %c0_5 = arith.constant 0 : index
    %c0_6 = arith.constant 0 : index
    %14 = vector.load %arg2[%c0_4, %c0_5, %c0_6] : memref<3x1x128xf32, #tpu.memory_space<vmem>>, vector<1x1x128xf32>
    %15 = vector.shape_cast %14 : vector<1x1x128xf32> to vector<1x128xf32>
    %16 = vector.broadcast %15 : vector<1x128xf32> to vector<8x128xf32>
    %17 = arith.addf %13, %16 : vector<8x128xf32>
    %c1 = arith.constant 1 : index
    %c0_7 = arith.constant 0 : index
    %c0_8 = arith.constant 0 : index
    %18 = vector.load %arg1[%c1, %c0_7, %c0_8] : memref<3x8x128xf32, #tpu.memory_space<vmem>>, vector<1x8x128xf32>
    %19 = vector.shape_cast %18 : vector<1x8x128xf32> to vector<8x128xf32>
    %c1_9 = arith.constant 1 : index
    %c0_10 = arith.constant 0 : index
    %c0_11 = arith.constant 0 : index
    %20 = vector.load %arg2[%c1_9, %c0_10, %c0_11] : memref<3x1x128xf32, #tpu.memory_space<vmem>>, vector<1x1x128xf32>
    %21 = vector.shape_cast %20 : vector<1x1x128xf32> to vector<1x128xf32>
    %22 = vector.broadcast %21 : vector<1x128xf32> to vector<8x128xf32>
    %23 = arith.addf %19, %22 : vector<8x128xf32>
    %c2 = arith.constant 2 : index
    %c0_12 = arith.constant 0 : index
    %c0_13 = arith.constant 0 : index
    %24 = vector.load %arg1[%c2, %c0_12, %c0_13] : memref<3x8x128xf32, #tpu.memory_space<vmem>>, vector<1x8x128xf32>
    %25 = vector.shape_cast %24 : vector<1x8x128xf32> to vector<8x128xf32>
    %c2_14 = arith.constant 2 : index
    %c0_15 = arith.constant 0 : index
    %c0_16 = arith.constant 0 : index
    %26 = vector.load %arg2[%c2_14, %c0_15, %c0_16] : memref<3x1x128xf32, #tpu.memory_space<vmem>>, vector<1x1x128xf32>
    %27 = vector.shape_cast %26 : vector<1x1x128xf32> to vector<1x128xf32>
    %28 = vector.broadcast %27 : vector<1x128xf32> to vector<8x128xf32>
    %29 = arith.addf %25, %28 : vector<8x128xf32>
    %c0_17 = arith.constant 0 : index
    %c0_18 = arith.constant 0 : index
    %30 = vector.load %arg3[%c0_17, %c0_18] : memref<128x128xf32, #tpu.memory_space<vmem>>, vector<128x128xf32>
    %cst = arith.constant dense<0.000000e+00> : vector<8x128xf32>
    %31 = tpu.matmul %23, %30, %cst {dimension_numbers = #tpu.dot_dimension_numbers<[1], [0], [0], [1], [0, 0, 1, 1], [], []>} : vector<8x128xf32>, vector<128x128xf32>, vector<8x128xf32> -> vector<8x128xf32>
    %32 = vector.broadcast %1 : vector<1x128xf32> to vector<8x128xf32>
    %33 = arith.addf %31, %32 : vector<8x128xf32>
    %c0_19 = arith.constant 0 : index
    %c0_20 = arith.constant 0 : index
    %34 = vector.load %arg4[%c0_19, %c0_20] : memref<128x256xf32, #tpu.memory_space<vmem>>, vector<128x256xf32>
    %cst_21 = arith.constant dense<0.000000e+00> : vector<8x256xf32>
    %35 = tpu.matmul %17, %34, %cst_21 {dimension_numbers = #tpu.dot_dimension_numbers<[1], [0], [0], [1], [0, 0, 1, 1], [], []>} : vector<8x128xf32>, vector<128x256xf32>, vector<8x256xf32> -> vector<8x256xf32>
    %36 = vector.broadcast %2 : vector<1x256xf32> to vector<8x256xf32>
    %37 = arith.addf %35, %36 : vector<8x256xf32>
    %c0_22 = arith.constant 0 : index
    %c0_23 = arith.constant 0 : index
    %38 = vector.load %arg4[%c0_22, %c0_23] : memref<128x256xf32, #tpu.memory_space<vmem>>, vector<128x256xf32>
    %cst_24 = arith.constant dense<0.000000e+00> : vector<8x256xf32>
    %39 = tpu.matmul %23, %38, %cst_24 {dimension_numbers = #tpu.dot_dimension_numbers<[1], [0], [0], [1], [0, 0, 1, 1], [], []>} : vector<8x128xf32>, vector<128x256xf32>, vector<8x256xf32> -> vector<8x256xf32>
    %40 = vector.broadcast %2 : vector<1x256xf32> to vector<8x256xf32>
    %41 = arith.addf %39, %40 : vector<8x256xf32>
    %c0_25 = arith.constant 0 : index
    %c0_26 = arith.constant 0 : index
    %42 = vector.load %arg4[%c0_25, %c0_26] : memref<128x256xf32, #tpu.memory_space<vmem>>, vector<128x256xf32>
    %cst_27 = arith.constant dense<0.000000e+00> : vector<8x256xf32>
    %43 = tpu.matmul %29, %42, %cst_27 {dimension_numbers = #tpu.dot_dimension_numbers<[1], [0], [0], [1], [0, 0, 1, 1], [], []>} : vector<8x128xf32>, vector<128x256xf32>, vector<8x256xf32> -> vector<8x256xf32>
    %44 = vector.broadcast %2 : vector<1x256xf32> to vector<8x256xf32>
    %45 = arith.addf %43, %44 : vector<8x256xf32>
    %46 = vector.extract_strided_slice %37 {offsets = [0, 0], sizes = [8, 128], strides = [1, 1]} : vector<8x256xf32> to vector<8x128xf32>
    %47 = vector.extract_strided_slice %41 {offsets = [0, 0], sizes = [8, 128], strides = [1, 1]} : vector<8x256xf32> to vector<8x128xf32>
    %48 = vector.extract_strided_slice %45 {offsets = [0, 0], sizes = [8, 128], strides = [1, 1]} : vector<8x256xf32> to vector<8x128xf32>
    %49 = vector.extract_strided_slice %37 {offsets = [0, 128], sizes = [8, 128], strides = [1, 1]} : vector<8x256xf32> to vector<8x128xf32>
    %50 = vector.extract_strided_slice %41 {offsets = [0, 128], sizes = [8, 128], strides = [1, 1]} : vector<8x256xf32> to vector<8x128xf32>
    %51 = vector.extract_strided_slice %45 {offsets = [0, 128], sizes = [8, 128], strides = [1, 1]} : vector<8x256xf32> to vector<8x128xf32>
    %cst_28 = arith.constant 1.280000e+02 : f32
    %52 = math.sqrt %cst_28 : f32
    %cst_29 = arith.constant 1.000000e+00 : f32
    %53 = arith.divf %cst_29, %52 : f32
    %54 = arith.mulf %33, %46 : vector<8x128xf32>
    %cst_30 = arith.constant dense<0.000000e+00> : vector<8xf32>
    %55 = vector.multi_reduction <add>, %54, %cst_30 [1] : vector<8x128xf32> to vector<8xf32>
    %56 = vector.shape_cast %55 : vector<8xf32> to vector<8x1xf32>
    %57 = vector.broadcast %53 : f32 to vector<8x1xf32>
    %58 = arith.mulf %56, %57 : vector<8x1xf32>
    %59 = arith.mulf %33, %47 : vector<8x128xf32>
    %cst_31 = arith.constant dense<0.000000e+00> : vector<8xf32>
    %60 = vector.multi_reduction <add>, %59, %cst_31 [1] : vector<8x128xf32> to vector<8xf32>
    %61 = vector.shape_cast %60 : vector<8xf32> to vector<8x1xf32>
    %62 = vector.broadcast %53 : f32 to vector<8x1xf32>
    %63 = arith.mulf %61, %62 : vector<8x1xf32>
    %64 = arith.mulf %33, %48 : vector<8x128xf32>
    %cst_32 = arith.constant dense<0.000000e+00> : vector<8xf32>
    %65 = vector.multi_reduction <add>, %64, %cst_32 [1] : vector<8x128xf32> to vector<8xf32>
    %66 = vector.shape_cast %65 : vector<8xf32> to vector<8x1xf32>
    %67 = vector.broadcast %53 : f32 to vector<8x1xf32>
    %68 = arith.mulf %66, %67 : vector<8x1xf32>
    %69 = arith.maximumf %58, %63 : vector<8x1xf32>
    %70 = arith.maximumf %69, %68 : vector<8x1xf32>
    %71 = arith.subf %58, %70 : vector<8x1xf32>
    %72 = math.exp %71 : vector<8x1xf32>
    %73 = arith.subf %63, %70 : vector<8x1xf32>
    %74 = math.exp %73 : vector<8x1xf32>
    %75 = arith.subf %68, %70 : vector<8x1xf32>
    %76 = math.exp %75 : vector<8x1xf32>
    %77 = arith.addf %72, %74 : vector<8x1xf32>
    %78 = arith.addf %77, %76 : vector<8x1xf32>
    %79 = vector.broadcast %72 : vector<8x1xf32> to vector<8x128xf32>
    %80 = arith.mulf %79, %49 : vector<8x128xf32>
    %81 = vector.broadcast %74 : vector<8x1xf32> to vector<8x128xf32>
    %82 = arith.mulf %81, %50 : vector<8x128xf32>
    %83 = arith.addf %80, %82 : vector<8x128xf32>
    %84 = vector.broadcast %76 : vector<8x1xf32> to vector<8x128xf32>
    %85 = arith.mulf %84, %51 : vector<8x128xf32>
    %86 = arith.addf %83, %85 : vector<8x128xf32>
    %87 = tpu.reciprocal %78 {approx = true} : vector<8x1xf32> -> vector<8x1xf32>
    %88 = vector.broadcast %87 : vector<8x1xf32> to vector<8x128xf32>
    %89 = arith.mulf %86, %88 : vector<8x128xf32>
    %c0_33 = arith.constant 0 : index
    %c0_34 = arith.constant 0 : index
    %90 = vector.load %arg5[%c0_33, %c0_34] : memref<128x128xf32, #tpu.memory_space<vmem>>, vector<128x128xf32>
    %cst_35 = arith.constant dense<0.000000e+00> : vector<8x128xf32>
    %91 = tpu.matmul %89, %90, %cst_35 {dimension_numbers = #tpu.dot_dimension_numbers<[1], [0], [0], [1], [0, 0, 1, 1], [], []>} : vector<8x128xf32>, vector<128x128xf32>, vector<8x128xf32> -> vector<8x128xf32>
    %92 = vector.broadcast %3 : vector<1x128xf32> to vector<8x128xf32>
    %93 = arith.addf %91, %92 : vector<8x128xf32>
    %94 = arith.addf %23, %93 : vector<8x128xf32>
    %cst_36 = arith.constant dense<0.000000e+00> : vector<8xf32>
    %95 = vector.multi_reduction <add>, %94, %cst_36 [1] : vector<8x128xf32> to vector<8xf32>
    %96 = vector.shape_cast %95 : vector<8xf32> to vector<8x1xf32>
    %cst_37 = arith.constant 1.280000e+02 : f32
    %97 = vector.broadcast %cst_37 : f32 to vector<8x1xf32>
    %98 = arith.divf %96, %97 : vector<8x1xf32>
    %99 = vector.broadcast %98 : vector<8x1xf32> to vector<8x128xf32>
    %100 = arith.subf %94, %99 : vector<8x128xf32>
    %101 = arith.mulf %100, %100 : vector<8x128xf32>
    %cst_38 = arith.constant dense<0.000000e+00> : vector<8xf32>
    %102 = vector.multi_reduction <add>, %101, %cst_38 [1] : vector<8x128xf32> to vector<8xf32>
    %103 = vector.shape_cast %102 : vector<8xf32> to vector<8x1xf32>
    %cst_39 = arith.constant 1.280000e+02 : f32
    %104 = vector.broadcast %cst_39 : f32 to vector<8x1xf32>
    %105 = arith.divf %103, %104 : vector<8x1xf32>
    %106 = vector.broadcast %98 : vector<8x1xf32> to vector<8x128xf32>
    %107 = arith.subf %94, %106 : vector<8x128xf32>
    %cst_40 = arith.constant 9.99999974E-6 : f32
    %108 = vector.broadcast %cst_40 : f32 to vector<8x1xf32>
    %109 = arith.addf %105, %108 : vector<8x1xf32>
    %110 = math.rsqrt %109 : vector<8x1xf32>
    %111 = vector.broadcast %110 : vector<8x1xf32> to vector<8x128xf32>
    %112 = arith.mulf %107, %111 : vector<8x128xf32>
    %113 = vector.broadcast %4 : vector<1x128xf32> to vector<8x128xf32>
    %114 = arith.mulf %112, %113 : vector<8x128xf32>
    %115 = vector.broadcast %5 : vector<1x128xf32> to vector<8x128xf32>
    %116 = arith.addf %114, %115 : vector<8x128xf32>
    %c0_41 = arith.constant 0 : index
    %c0_42 = arith.constant 0 : index
    %117 = vector.load %arg6[%c0_41, %c0_42] : memref<128x192xf32, #tpu.memory_space<vmem>>, vector<128x192xf32>
    %cst_43 = arith.constant dense<0.000000e+00> : vector<8x192xf32>
    %118 = tpu.matmul %116, %117, %cst_43 {dimension_numbers = #tpu.dot_dimension_numbers<[1], [0], [0], [1], [0, 0, 1, 1], [], []>} : vector<8x128xf32>, vector<128x192xf32>, vector<8x192xf32> -> vector<8x192xf32>
    %119 = vector.broadcast %6 : vector<1x192xf32> to vector<8x192xf32>
    %120 = arith.addf %118, %119 : vector<8x192xf32>
    %cst_44 = arith.constant 0.000000e+00 : f32
    %121 = vector.broadcast %cst_44 : f32 to vector<8x192xf32>
    %122 = arith.maximumf %120, %121 : vector<8x192xf32>
    %c0_45 = arith.constant 0 : index
    %c0_46 = arith.constant 0 : index
    %123 = vector.load %arg7[%c0_45, %c0_46] : memref<192x128xf32, #tpu.memory_space<vmem>>, vector<192x128xf32>
    %cst_47 = arith.constant dense<0.000000e+00> : vector<8x128xf32>
    %124 = tpu.matmul %122, %123, %cst_47 {dimension_numbers = #tpu.dot_dimension_numbers<[1], [0], [0], [1], [0, 0, 1, 1], [], []>} : vector<8x192xf32>, vector<192x128xf32>, vector<8x128xf32> -> vector<8x128xf32>
    %125 = vector.broadcast %7 : vector<1x128xf32> to vector<8x128xf32>
    %126 = arith.addf %124, %125 : vector<8x128xf32>
    %127 = arith.addf %116, %126 : vector<8x128xf32>
    %cst_48 = arith.constant dense<0.000000e+00> : vector<8xf32>
    %128 = vector.multi_reduction <add>, %127, %cst_48 [1] : vector<8x128xf32> to vector<8xf32>
    %129 = vector.shape_cast %128 : vector<8xf32> to vector<8x1xf32>
    %cst_49 = arith.constant 1.280000e+02 : f32
    %130 = vector.broadcast %cst_49 : f32 to vector<8x1xf32>
    %131 = arith.divf %129, %130 : vector<8x1xf32>
    %132 = vector.broadcast %131 : vector<8x1xf32> to vector<8x128xf32>
    %133 = arith.subf %127, %132 : vector<8x128xf32>
    %134 = arith.mulf %133, %133 : vector<8x128xf32>
    %cst_50 = arith.constant dense<0.000000e+00> : vector<8xf32>
    %135 = vector.multi_reduction <add>, %134, %cst_50 [1] : vector<8x128xf32> to vector<8xf32>
    %136 = vector.shape_cast %135 : vector<8xf32> to vector<8x1xf32>
    %cst_51 = arith.constant 1.280000e+02 : f32
    %137 = vector.broadcast %cst_51 : f32 to vector<8x1xf32>
    %138 = arith.divf %136, %137 : vector<8x1xf32>
    %139 = vector.broadcast %131 : vector<8x1xf32> to vector<8x128xf32>
    %140 = arith.subf %127, %139 : vector<8x128xf32>
    %cst_52 = arith.constant 9.99999974E-6 : f32
    %141 = vector.broadcast %cst_52 : f32 to vector<8x1xf32>
    %142 = arith.addf %138, %141 : vector<8x1xf32>
    %143 = math.rsqrt %142 : vector<8x1xf32>
    %144 = vector.broadcast %143 : vector<8x1xf32> to vector<8x128xf32>
    %145 = arith.mulf %140, %144 : vector<8x128xf32>
    %146 = vector.broadcast %8 : vector<1x128xf32> to vector<8x128xf32>
    %147 = arith.mulf %145, %146 : vector<8x128xf32>
    %148 = vector.broadcast %9 : vector<1x128xf32> to vector<8x128xf32>
    %149 = arith.addf %147, %148 : vector<8x128xf32>
    %c0_53 = arith.constant 0 : index
    %c0_54 = arith.constant 0 : index
    %150 = vector.load %arg8[%c0_53, %c0_54] : memref<128x256xf32, #tpu.memory_space<vmem>>, vector<128x256xf32>
    %cst_55 = arith.constant dense<0.000000e+00> : vector<8x256xf32>
    %151 = tpu.matmul %149, %150, %cst_55 {dimension_numbers = #tpu.dot_dimension_numbers<[1], [0], [0], [1], [0, 0, 1, 1], [], []>} : vector<8x128xf32>, vector<128x256xf32>, vector<8x256xf32> -> vector<8x256xf32>
    %152 = vector.broadcast %10 : vector<1x256xf32> to vector<8x256xf32>
    %153 = arith.addf %151, %152 : vector<8x256xf32>
    %cst_56 = arith.constant 0.000000e+00 : f32
    %154 = vector.broadcast %cst_56 : f32 to vector<8x256xf32>
    %155 = arith.maximumf %153, %154 : vector<8x256xf32>
    %c0_57 = arith.constant 0 : index
    %c0_58 = arith.constant 0 : index
    %156 = vector.load %arg9[%c0_57, %c0_58] : memref<256x256xf32, #tpu.memory_space<vmem>>, vector<256x256xf32>
    %cst_59 = arith.constant dense<0.000000e+00> : vector<8x256xf32>
    %157 = tpu.matmul %155, %156, %cst_59 {dimension_numbers = #tpu.dot_dimension_numbers<[1], [0], [0], [1], [0, 0, 1, 1], [], []>} : vector<8x256xf32>, vector<256x256xf32>, vector<8x256xf32> -> vector<8x256xf32>
    %158 = vector.broadcast %11 : vector<1x256xf32> to vector<8x256xf32>
    %159 = arith.addf %157, %158 : vector<8x256xf32>
    %c0_60 = arith.constant 0 : index
    %c0_61 = arith.constant 0 : index
    %160 = vector.load %arg11[%c0_60, %c0_61] : memref<8x256xf32, #tpu.memory_space<vmem>>, vector<8x256xf32>
    tpu.vector_store %arg11[%c0_60, %c0_61], %159 {strides = array<i32>} : memref<8x256xf32, #tpu.memory_space<vmem>>, vector<8x256xf32>,
    return
  }
  func.func @transform_0(%arg0: i32) -> (i32, i32, i32) {
    %c0_i32 = arith.constant 0 : i32
    %c0_i32_0 = arith.constant 0 : i32
    %c0_i32_1 = arith.constant 0 : i32
    return %c0_i32, %arg0, %c0_i32_0 : i32, i32, i32
  }
  func.func @transform_1(%arg0: i32) -> (i32, i32, i32) {
    %c0_i32 = arith.constant 0 : i32
    %c0_i32_0 = arith.constant 0 : i32
    %c0_i32_1 = arith.constant 0 : i32
    %c0_i32_2 = arith.constant 0 : i32
    return %c0_i32, %c0_i32_0, %c0_i32_1 : i32, i32, i32
  }
  func.func @transform_2(%arg0: i32) -> (i32, i32) {
    %c0_i32 = arith.constant 0 : i32
    %c0_i32_0 = arith.constant 0 : i32
    %c0_i32_1 = arith.constant 0 : i32
    return %c0_i32, %c0_i32_0 : i32, i32
  }
  func.func @transform_3(%arg0: i32) -> (i32, i32) {
    %c0_i32 = arith.constant 0 : i32
    %c0_i32_0 = arith.constant 0 : i32
    %c0_i32_1 = arith.constant 0 : i32
    return %c0_i32, %c0_i32_0 : i32, i32
  }
  func.func @transform_4(%arg0: i32) -> (i32, i32) {
    %c0_i32 = arith.constant 0 : i32
    %c0_i32_0 = arith.constant 0 : i32
    %c0_i32_1 = arith.constant 0 : i32
    return %c0_i32, %c0_i32_0 : i32, i32
  }
  func.func @transform_5(%arg0: i32) -> (i32, i32) {
    %c0_i32 = arith.constant 0 : i32
    %c0_i32_0 = arith.constant 0 : i32
    %c0_i32_1 = arith.constant 0 : i32
    return %c0_i32, %c0_i32_0 : i32, i32
  }
  func.func @transform_6(%arg0: i32) -> (i32, i32) {
    %c0_i32 = arith.constant 0 : i32
    %c0_i32_0 = arith.constant 0 : i32
    %c0_i32_1 = arith.constant 0 : i32
    return %c0_i32, %c0_i32_0 : i32, i32
  }
  func.func @transform_7(%arg0: i32) -> (i32, i32) {
    %c0_i32 = arith.constant 0 : i32
    %c0_i32_0 = arith.constant 0 : i32
    %c0_i32_1 = arith.constant 0 : i32
    return %c0_i32, %c0_i32_0 : i32, i32
  }
  func.func @transform_8(%arg0: i32) -> (i32, i32) {
    %c0_i32 = arith.constant 0 : i32
    %c0_i32_0 = arith.constant 0 : i32
    %c0_i32_1 = arith.constant 0 : i32
    return %c0_i32, %c0_i32_0 : i32, i32
  }
  func.func @transform_9(%arg0: i32) -> (i32, i32) {
    %c0_i32 = arith.constant 0 : i32
    %c0_i32_0 = arith.constant 0 : i32
    %c0_i32_1 = arith.constant 0 : i32
    return %c0_i32, %c0_i32_0 : i32, i32
  }
  func.func @transform_10(%arg0: i32) -> (i32, i32) {
    %c0_i32 = arith.constant 0 : i32
    %c0_i32_0 = arith.constant 0 : i32
    return %arg0, %c0_i32 : i32, i32
  }
}

</mosaic_0001>

<bundles_post_ra>
// kernel: tpu_custom_call.1
= control target key start
LH: loop header
LB: loop body
LE: loop exit
PB: predicated region body
PF: predicated region fallthrough
CT: control target
= control target key end

     0   :  { %15 = vsyncpa [#allocation3], 0  ;;  %s1618_s0 = inlined_call_operand.hbm [shape: f32[3,8,128], index: 0, kind: input, shape index: {}]   ;;  %s1619_s1 = inlined_call_operand.hbm [shape: f32[3,1,128], index: 1, kind: input, shape index: {}]   ;;  %s1620_s2 = inlined_call_operand.hbm [shape: f32[128,128], index: 2, kind: input, shape index: {}]   ;;  %s1621_s3 = inlined_call_operand.vmem [shape: f32[128,256], index: 3, kind: input, shape index: {}]   ;;  %s1622_s4 = inlined_call_operand.hbm [shape: f32[128,128], index: 4, kind: input, shape index: {}]   ;;  %s1623_s5 = inlined_call_operand.vmem [shape: f32[128,192], index: 5, kind: input, shape index: {}]   ;;  %s1624_s6 = inlined_call_operand.vmem [shape: f32[192,128], index: 6, kind: input, shape index: {}]   ;;  %s1625_s7 = inlined_call_operand.hbm [shape: f32[128,256], index: 7, kind: input, shape index: {}]   ;;  %s1626_s8 = inlined_call_operand.hbm [shape: f32[256,256], index: 8, kind: input, shape index: {}]   ;;  %s1627_s9 = inlined_call_operand.hbm [shape: f32[11,256], index: 9, kind: input, shape index: {}]   ;;  %s1628_s10 = inlined_call_operand.hbm [shape: f32[8,256], index: 10, kind: output, shape index: {}]  }
   0x1   :  { %16 = vsyncpa [#allocation6], 0 }
   0x2   :  { %17 = vsyncpa [#allocation9], 0 }
   0x3   :  { %18 = vsyncpa [#allocation12], 0  ;;  %s37_s15 = sshll.u32 %s1619_s1, 4  ;;  %s38_s15 = int_to_ptr.hbm [resolvable:$true] %s37_s15 }
   0x4   :  { %19 = vsyncpa [#allocation4], 0  ;;  %s1111_s16 = smov [#allocation5]   ;;  %s1112_s18 = smov 16  }
   0x5   :  { %s39_s17 = sshll.u32 %s1111_s16, 4  ;;  %s1113_s19 = smov 1   ;;  %s40_s17 = int_to_ptr.vmem [resolvable:$true] %s39_s17 }
   0x6   :  { %45 = dma.hbm_to_vmem [thread:$0]  %s38_s15, 48, %s40_s17, [#allocation6], %s1112_s18, %s1112_s18, %s1113_s19  }
   0x7   :  { %s65_s22 = sshll.u32 %s1622_s4, 4  ;;  %s1114_s23 = smov [#allocation8]   ;;  %s66_s22 = int_to_ptr.hbm [resolvable:$true] %s65_s22 }
   0x8   :  { %s67_s24 = sshll.u32 %s1114_s23, 4  ;;  %s95_s26 = sshll.u32 %s1626_s8, 4  ;;  %s68_s24 = int_to_ptr.vmem [resolvable:$true] %s67_s24  ;;  %s96_s26 = int_to_ptr.hbm [resolvable:$true] %s95_s26 }
   0x9   :  { %s1115_s27 = smov 128   ;;  %s1116_s28 = smov 8  }
   0xa   :  { %73 = dma.hbm_to_vmem [thread:$0]  %s66_s22, 2048, %s68_s24, [#allocation9], %s1115_s27, %s1115_s27, %s1116_s28  }
   0xb   :  { %s1117_s29 = smov [#allocation11]   ;;  %s24_s13 = sshll.u32 %s1618_s0, 4  ;;  %s25_s13 = int_to_ptr.hbm [resolvable:$true] %s24_s13 }
   0xc   :  { %s97_s30 = sshll.u32 %s1117_s29, 4  ;;  %s1118_s4 = smov 256   ;;  %s98_s30 = int_to_ptr.vmem [resolvable:$true] %s97_s30 }
   0xd   :  { %103 = dma.hbm_to_vmem [thread:$0]  %s96_s26, 8192, %s98_s30, [#allocation12], %s1118_s4, %s1118_s4, %s1112_s18  }
   0xe   :  { %s50_s16 = sshll.u32 %s1620_s2, 4  ;;  %s1119_s8 = smov [#allocation2]   ;;  %s51_s16 = int_to_ptr.hbm [resolvable:$true] %s50_s16 }
   0xf   :  { %s26_s17 = sshll.u32 %s1119_s8, 4  ;;  %s1120_s19 = smov [#allocation7]   ;;  %s27_s17 = int_to_ptr.vmem [resolvable:$true] %s26_s17 }
  0x10   :  { %32 = dma.hbm_to_vmem [thread:$0]  %s25_s13, 384, %s27_s17, [#allocation3], %s1115_s27, %s1115_s27, %s1116_s28  }
  0x11   :  { %s52_s20 = sshll.u32 %s1120_s19, 4  ;;  %s82_s0 = sshll.u32 %s1625_s7, 4  ;;  %s53_s20 = int_to_ptr.vmem [resolvable:$true] %s52_s20  ;;  %s83_s0 = int_to_ptr.hbm [resolvable:$true] %s82_s0 }
  0x12   :  { %58 = dma.hbm_to_vmem [thread:$0]  %s51_s16, 2048, %s53_s20, [#allocation6], %s1115_s27, %s1115_s27, %s1116_s28  }
  0x13   :  { %s108_s25 = sshll.u32 %s1627_s9, 4  ;;  %s1121_s1 = smov [#allocation10]   ;;  %s109_s25 = int_to_ptr.hbm [resolvable:$true] %s108_s25 }
  0x14   :  { %s84_s2 = sshll.u32 %s1121_s1, 4  ;;  %s1122_s26 = smov [#allocation13]   ;;  %s85_s2 = int_to_ptr.vmem [resolvable:$true] %s84_s2 }
  0x15   :  { %90 = dma.hbm_to_vmem [thread:$0]  %s83_s0, 4096, %s85_s2, [#allocation9], %s1118_s4, %s1118_s4, %s1112_s18  }
  0x16   :  { %s110_s29 = sshll.u32 %s1122_s26, 4  ;;  %s111_s29 = int_to_ptr.vmem [resolvable:$true] %s110_s29 }
  0x17   :  { %116 = dma.hbm_to_vmem [thread:$0]  %s109_s25, 512, %s111_s29, [#allocation12], %s1118_s4, %s1118_s4, %s1112_s18  }
  0x18   :  { %1101 = dma.done.wait [#allocation3], 384  }
  0x19   :  { %1102 = vsyncadd [#allocation3], 4294966912 }
  0x1a   :  { %1103 = dma.done.wait [#allocation6], 2096  }
  0x1b   :  { %1104 = vsyncadd [#allocation6], 4294965200 }
  0x1c   :  { %1105 = dma.done.wait [#allocation9], 6144  }
  0x1d   :  { %1106 = vsyncadd [#allocation9], 4294961152 }
  0x1e   :  { %1107 = dma.done.wait [#allocation12], 8704  }
  0x1f   :  { %1108 = vsyncadd [#allocation12], 4294958592  ;;  %v1209_v0 = vld [vmem:[%s1621_s3 + $0xf0] sm:$0xff]  ;;  %v1214_v1 = vld [vmem:[%s1621_s3 + $0xe0] sm:$0xff]  ;;  %vm564_vm4 = vcmask 523264   ;;  %s864_s14 = sshll.u32 %s1628_s10, 4  ;;  %s865_s14 = int_to_ptr.hbm [resolvable:$true] %s864_s14 }
  0x20   :  { %242 = vmatpush.msra.mxu1 %v1209_v0  ;;  %282 = vmatpush.msra.mxu3 %v1209_v0  ;;  %v1221_v2 = vld [vmem:[%s1621_s3 + $0xd0] sm:$0xff]  ;;  %v1227_v5 = vld [vmem:[%s1621_s3 + $0xc0] sm:$0xff]  ;;  %v893_v28 = vld [vmem:[#allocation5] ss:$0 sm:$0xff] }
  0x21   :  { %v186_v3 = vld [vmem:[#allocation7 + $0x78] sm:$0xff]  ;;  %v185_v4 = vld [vmem:[#allocation7 + $0x70] sm:$0xff]  ;;  %v184_v6 = vld [vmem:[#allocation7 + $0x68] sm:$0xff] }
  0x22   :  { %243 = vmatpush.msra.mxu1 %v1214_v1  ;;  %188 = vmatpush.msra.mxu0 %v186_v3  ;;  %v1234_v7 = vld [vmem:[%s1621_s3 + $0xb0] sm:$0xff]  ;;  %v183_v8 = vld [vmem:[#allocation7 + $0x60] sm:$0xff]  ;;  %v180_v14 = vld [vmem:[#allocation7 + $0x48] sm:$0xff] }
  0x23   :  { %283 = vmatpush.msra.mxu3 %v1214_v1  ;;  %v1241_v9 = vld [vmem:[%s1621_s3 + $0xa0] sm:$0xff]  ;;  %v182_v10 = vld [vmem:[#allocation7 + $0x58] sm:$0xff]  ;;  %v181_v12 = vld [vmem:[#allocation7 + $0x50] sm:$0xff] }
  0x24   :  { %244 = vmatpush.msra.mxu1 %v1221_v2  ;;  %189 = vmatpush.msra.mxu0 %v185_v4  ;;  %v1248_v11 = vld [vmem:[%s1621_s3 + $0x90] sm:$0xff]  ;;  %v1255_v13 = vld [vmem:[%s1621_s3 + $0x80] sm:$0xff]  ;;  %v892_v30 = vld [vmem:[#allocation5 + $0x1] ss:$0 sm:$0xff] }
  0x25   :  { %284 = vmatpush.msra.mxu3 %v1221_v2  ;;  %v1262_v15 = vld [vmem:[%s1621_s3 + $0x70] sm:$0xff]  ;;  %v179_v16 = vld [vmem:[#allocation7 + $0x40] sm:$0xff]  ;;  %v176_v22 = vld [vmem:[#allocation7 + $0x28] sm:$0xff] }
  0x26   :  { %245 = vmatpush.msra.mxu1 %v1227_v5  ;;  %190 = vmatpush.msra.mxu0 %v184_v6  ;;  %v1269_v17 = vld [vmem:[%s1621_s3 + $0x60] sm:$0xff]  ;;  %v178_v18 = vld [vmem:[#allocation7 + $0x38] sm:$0xff]  ;;  %v177_v20 = vld [vmem:[#allocation7 + $0x30] sm:$0xff] }
  0x27   :  { %285 = vmatpush.msra.mxu3 %v1227_v5  ;;  %v1276_v19 = vld [vmem:[%s1621_s3 + $0x50] sm:$0xff]  ;;  %v1283_v21 = vld [vmem:[%s1621_s3 + $0x40] sm:$0xff]  ;;  %v156_v32 = vld [vmem:[#allocation2 + $0x8] sm:$0xff] }
  0x28   :  { %246 = vmatpush.msra.mxu1 %v1234_v7  ;;  %191 = vmatpush.msra.mxu0 %v183_v8  ;;  %v1290_v23 = vld [vmem:[%s1621_s3 + $0x30] sm:$0xff]  ;;  %v175_v24 = vld [vmem:[#allocation7 + $0x20] sm:$0xff]  ;;  %v172_v34 = vld [vmem:[#allocation7 + $0x8] sm:$0xff]  ;;  %v1318_v37 = vadd.f32 %v892_v30, %v156_v32 }
  0x29   :  { %286 = vmatpush.msra.mxu3 %v1234_v7  ;;  %v1297_v25 = vld [vmem:[%s1621_s3 + $0x20] sm:$0xff]  ;;  %v174_v26 = vld [vmem:[#allocation7 + $0x18] sm:$0xff]  ;;  %v173_v29 = vld [vmem:[#allocation7 + $0x10] sm:$0xff] }
  0x2a   :  { %247 = vmatpush.msra.mxu1 %v1241_v9  ;;  %192 = vmatpush.msra.mxu0 %v182_v10  ;;  %v1304_v27 = vld [vmem:[%s1621_s3 + $0x10] sm:$0xff]  ;;  %v149_v31 = vld [vmem:[#allocation2] sm:$0xff]  ;;  %v1326_v38 = vld [vmem:[%s1621_s3 + $0xf8] sm:$0xff] }
  0x2b   :  { %287 = vmatpush.msra.mxu3 %v1241_v9  ;;  %v1311_v33 = vld [vmem:[%s1621_s3] sm:$0xff]  ;;  %v1315_v35 = vadd.f32 %v893_v28, %v149_v31  ;;  %v1334_v39 = vld [vmem:[%s1621_s3 + $0xe8] sm:$0xff]  ;;  %262 = vmatpush.msra.mxu2 %v1326_v38  ;;  %v1342_v40 = vld [vmem:[%s1621_s3 + $0xd8] sm:$0xff] }
  0x2c   :  { %248 = vmatpush.msra.mxu1 %v1248_v11  ;;  %193 = vmatpush.msra.mxu0 %v181_v12  ;;  %v171_v36 = vld [vmem:[#allocation7] sm:$0xff]  ;;  %v233_v41 = vld [vmem:[%s1621_s3 + $0xc8] sm:$0xff]  ;;  %v894_v50 = vld [vmem:[#allocation5 + $0x2] ss:$0 sm:$0xff] }
  0x2d   :  { %288 = vmatpush.msra.mxu3 %v1248_v11  ;;  %263 = vmatpush.msra.mxu2 %v1334_v39  ;;  %v231_v42 = vld [vmem:[%s1621_s3 + $0xb8] sm:$0xff]  ;;  %v229_v43 = vld [vmem:[%s1621_s3 + $0xa8] sm:$0xff]  ;;  %v164_v51 = vld [vmem:[#allocation2 + $0x10] sm:$0xff] }
  0x2e   :  { %249 = vmatpush.msra.mxu1 %v1255_v13  ;;  %194 = vmatpush.msra.mxu0 %v180_v14  ;;  %v227_v44 = vld [vmem:[%s1621_s3 + $0x98] sm:$0xff]  ;;  %v225_v45 = vld [vmem:[%s1621_s3 + $0x88] sm:$0xff]  ;;  %v170_v54 = vadd.f32 %v894_v50, %v164_v51 }
  0x2f   :  { %289 = vmatpush.msra.mxu3 %v1255_v13  ;;  %264 = vmatpush.msra.mxu2 %v1342_v40  ;;  %v223_v46 = vld [vmem:[%s1621_s3 + $0x78] sm:$0xff]  ;;  %v221_v47 = vld [vmem:[%s1621_s3 + $0x68] sm:$0xff] }
  0x30   :  { %250 = vmatpush.msra.mxu1 %v1262_v15  ;;  %195 = vmatpush.msra.mxu0 %v179_v16  ;;  %v219_v48 = vld [vmem:[%s1621_s3 + $0x58] sm:$0xff]  ;;  %v217_v49 = vld [vmem:[%s1621_s3 + $0x48] sm:$0xff] }
  0x31   :  { %290 = vmatpush.msra.mxu3 %v1262_v15  ;;  %265 = vmatpush.msra.mxu2 %v233_v41  ;;  %v215_v52 = vld [vmem:[%s1621_s3 + $0x38] sm:$0xff]  ;;  %v213_v53 = vld [vmem:[%s1621_s3 + $0x28] sm:$0xff] }
  0x32   :  { %251 = vmatpush.msra.mxu1 %v1269_v17  ;;  %196 = vmatpush.msra.mxu0 %v178_v18  ;;  %v211_v55 = vld [vmem:[%s1621_s3 + $0x18] sm:$0xff]  ;;  %v209_v56 = vld [vmem:[%s1621_s3 + $0x8] sm:$0xff] }
  0x33   :  { %291 = vmatpush.msra.mxu3 %v1269_v17  ;;  %266 = vmatpush.msra.mxu2 %v231_v42  ;;  %v1406_v57 = vld [vmem:[#allocation13] sm:$0xff]  ;;  %v408_v8 = vld [vmem:[#allocation8 + $0x70] sm:$0xff]  ;;  %v399_v18 = vld [vmem:[#allocation8 + $0x28] sm:$0xff] }
  0x34   :  { %252 = vmatpush.msra.mxu1 %v1276_v19  ;;  %197 = vmatpush.msra.mxu0 %v177_v20  ;;  %v240_v58 = vperm.slane %v1406_v57, 1  ;;  %v187_v59 = vperm.slane %v1406_v57, 0  ;;  %v406_v10 = vld [vmem:[#allocation8 + $0x60] sm:$0xff]  ;;  %v404_v12 = vld [vmem:[#allocation8 + $0x50] sm:$0xff]  ;;  %v397_v20 = vld [vmem:[#allocation8 + $0x18] sm:$0xff] }
  0x35   :  { %292 = vmatpush.msra.mxu3 %v1276_v19  ;;  %267 = vmatpush.msra.mxu2 %v229_v43  ;;  %v402_v14 = vld [vmem:[#allocation8 + $0x40] sm:$0xff] }
  0x36   :  { %253 = vmatpush.msra.mxu1 %v1283_v21  ;;  %198 = vmatpush.msra.mxu0 %v176_v22  ;;  %v395_v22 = vld [vmem:[#allocation8 + $0x8] sm:$0xff] }
  0x37   :  { %293 = vmatpush.msra.mxu3 %v1283_v21  ;;  %268 = vmatpush.msra.mxu2 %v227_v44 }
  0x38   :  { %254 = vmatpush.msra.mxu1 %v1290_v23  ;;  %199 = vmatpush.msra.mxu0 %v175_v24  ;;  %v394_v24 = vld [vmem:[#allocation8] sm:$0xff] }
  0x39   :  { %294 = vmatpush.msra.mxu3 %v1290_v23  ;;  %269 = vmatpush.msra.mxu2 %v225_v45 }
  0x3a   :  { %255 = vmatpush.msra.mxu1 %v1297_v25  ;;  %200 = vmatpush.msra.mxu0 %v174_v26 }
  0x3b   :  { %295 = vmatpush.msra.mxu3 %v1297_v25  ;;  %270 = vmatpush.msra.mxu2 %v223_v46 }
  0x3c   :  { %256 = vmatpush.msra.mxu1 %v1304_v27  ;;  %201 = vmatpush.msra.mxu0 %v173_v29 }
  0x3d   :  { %296 = vmatpush.msra.mxu3 %v1304_v27  ;;  %271 = vmatpush.msra.mxu2 %v221_v47 }
  0x3e   :  { %257 = vmatpush.msra.mxu1 %v1311_v33  ;;  %202 = vmatpush.msra.mxu0 %v172_v34 }
  0x3f   :  { %297 = vmatpush.msra.mxu3 %v1311_v33  ;;  %258 = vmatmul.f32.vlgmr.msra.gmra.mxu1 %v1315_v35 }
  0x40   :  { %322 = vmatpush.msrb.mxu1 %v1209_v0  ;;  %203 = vmatpush.msra.mxu0 %v171_v36  ;;  %v1410_v36 = vld [vmem:[#allocation13 + $0x8] sm:$0xff] }
  0x41   :  { %204 = vmatmul.f32.vlgmr.msra.gmra.mxu0 %v1318_v37  ;;  %298 = vmatmul.f32.vlgmr.msra.gmra.mxu3 %v1318_v37 }
  0x42   :  { %323 = vmatpush.msrb.mxu1 %v1214_v1  ;;  %302 = vmatpush.msrb.mxu0 %v1326_v38 }
  0x43   :  { %272 = vmatpush.msra.mxu2 %v219_v48 }
  0x44   :  { %324 = vmatpush.msrb.mxu1 %v1221_v2  ;;  %303 = vmatpush.msrb.mxu0 %v1334_v39 }
  0x45   :  { %273 = vmatpush.msra.mxu2 %v217_v49 }
  0x46   :  { %325 = vmatpush.msrb.mxu1 %v1227_v5  ;;  %304 = vmatpush.msrb.mxu0 %v1342_v40 }
  0x47   :  { %274 = vmatpush.msra.mxu2 %v215_v52 }
  0x48   :  { %326 = vmatpush.msrb.mxu1 %v1234_v7  ;;  %305 = vmatpush.msrb.mxu0 %v233_v41  ;;  %v409_v7 = vld [vmem:[#allocation8 + $0x78] sm:$0xff] }
  0x49   :  { %275 = vmatpush.msra.mxu2 %v213_v53  ;;  %411 = vmatpush.msrb.mxu3 %v409_v7 }
  0x4a   :  { %327 = vmatpush.msrb.mxu1 %v1241_v9  ;;  %306 = vmatpush.msrb.mxu0 %v231_v42  ;;  %v407_v9 = vld [vmem:[#allocation8 + $0x68] sm:$0xff] }
  0x4b   :  { %276 = vmatpush.msra.mxu2 %v211_v55  ;;  %412 = vmatpush.msrb.mxu3 %v408_v8 }
  0x4c   :  { %328 = vmatpush.msrb.mxu1 %v1248_v11  ;;  %307 = vmatpush.msrb.mxu0 %v229_v43  ;;  %v405_v11 = vld [vmem:[#allocation8 + $0x58] sm:$0xff] }
  0x4d   :  { %277 = vmatpush.msra.mxu2 %v209_v56  ;;  %413 = vmatpush.msrb.mxu3 %v407_v9 }
  0x4e   :  { %329 = vmatpush.msrb.mxu1 %v1255_v13  ;;  %308 = vmatpush.msrb.mxu0 %v227_v44  ;;  %v403_v13 = vld [vmem:[#allocation8 + $0x48] sm:$0xff] }
  0x4f   :  { %342 = vmatpush.msrb.mxu2 %v1326_v38  ;;  %414 = vmatpush.msrb.mxu3 %v406_v10 }
  0x50   :  { %330 = vmatpush.msrb.mxu1 %v1262_v15  ;;  %309 = vmatpush.msrb.mxu0 %v225_v45  ;;  %v401_v15 = vld [vmem:[#allocation8 + $0x38] sm:$0xff] }
  0x51   :  { %278 = vmatmul.f32.vlgmr.msra.gmra.mxu2 %v1315_v35  ;;  %415 = vmatpush.msrb.mxu3 %v405_v11 }
  0x52   :  { %331 = vmatpush.msrb.mxu1 %v1269_v17  ;;  %310 = vmatpush.msrb.mxu0 %v223_v46  ;;  %v400_v17 = vld [vmem:[#allocation8 + $0x30] sm:$0xff] }
  0x53   :  { %343 = vmatpush.msrb.mxu2 %v1334_v39  ;;  %416 = vmatpush.msrb.mxu3 %v404_v12 }
  0x54   :  { %332 = vmatpush.msrb.mxu1 %v1276_v19  ;;  %311 = vmatpush.msrb.mxu0 %v221_v47  ;;  %v398_v19 = vld [vmem:[#allocation8 + $0x20] sm:$0xff] }
  0x55   :  { %344 = vmatpush.msrb.mxu2 %v1342_v40  ;;  %417 = vmatpush.msrb.mxu3 %v403_v13  ;;  %v241_v40 = vperm.slane %v1410_v36, 1  ;;  %v489_v13 = vld [vmem:[%s1623_s5 + $0xd0] sm:$0xff] }
  0x56   :  { %333 = vmatpush.msrb.mxu1 %v1283_v21  ;;  %312 = vmatpush.msrb.mxu0 %v219_v48  ;;  %v396_v21 = vld [vmem:[#allocation8 + $0x10] sm:$0xff] }
  0x57   :  { %345 = vmatpush.msrb.mxu2 %v233_v41  ;;  %418 = vmatpush.msrb.mxu3 %v402_v14  ;;  %v490_v14 = vld [vmem:[%s1623_s5 + $0xd8] sm:$0xff] }
  0x58   :  { %334 = vmatpush.msrb.mxu1 %v1290_v23  ;;  %313 = vmatpush.msrb.mxu0 %v217_v49 }
  0x59   :  { %346 = vmatpush.msrb.mxu2 %v231_v42  ;;  %419 = vmatpush.msrb.mxu3 %v401_v15  ;;  %v487_v15 = vld [vmem:[%s1623_s5 + $0xc0] sm:$0xff] }
  0x5a   :  { %335 = vmatpush.msrb.mxu1 %v1297_v25  ;;  %314 = vmatpush.msrb.mxu0 %v215_v52 }
  0x5b   :  { %347 = vmatpush.msrb.mxu2 %v229_v43  ;;  %420 = vmatpush.msrb.mxu3 %v400_v17  ;;  %v485_v17 = vld [vmem:[%s1623_s5 + $0xb0] sm:$0xff] }
  0x5c   :  { %336 = vmatpush.msrb.mxu1 %v1304_v27  ;;  %315 = vmatpush.msrb.mxu0 %v213_v53 }
  0x5d   :  { %348 = vmatpush.msrb.mxu2 %v227_v44  ;;  %421 = vmatpush.msrb.mxu3 %v399_v18  ;;  %v486_v18 = vld [vmem:[%s1623_s5 + $0xb8] sm:$0xff] }
  0x5e   :  { %337 = vmatpush.msrb.mxu1 %v1311_v33  ;;  %316 = vmatpush.msrb.mxu0 %v211_v55 }
  0x5f   :  { %338 = vmatmul.f32.vlgmr.msrb.gmra.mxu1 %v170_v54  ;;  %349 = vmatpush.msrb.mxu2 %v225_v45 }
  0x60   :  { %317 = vmatpush.msrb.mxu0 %v209_v56  ;;  %422 = vmatpush.msrb.mxu3 %v398_v19  ;;  %v483_v19 = vld [vmem:[%s1623_s5 + $0xa0] sm:$0xff] }
  0x61   :  { %318 = vmatmul.f32.vlgmr.msrb.gmra.mxu0 %v1318_v37  ;;  %350 = vmatpush.msrb.mxu2 %v223_v46 }
  0x62   :  { %423 = vmatpush.msrb.mxu3 %v397_v20  ;;  %v484_v20 = vld [vmem:[%s1623_s5 + $0xa8] sm:$0xff] }
  0x63   :  { %351 = vmatpush.msrb.mxu2 %v221_v47 }
  0x64   :  { %424 = vmatpush.msrb.mxu3 %v396_v21  ;;  %v481_v21 = vld [vmem:[%s1623_s5 + $0x90] sm:$0xff] }
  0x65   :  { %352 = vmatpush.msrb.mxu2 %v219_v48 }
  0x66   :  { %425 = vmatpush.msrb.mxu3 %v395_v22  ;;  %v482_v22 = vld [vmem:[%s1623_s5 + $0x98] sm:$0xff] }
  0x67   :  { %353 = vmatpush.msrb.mxu2 %v217_v49 }
  0x68   :  { %426 = vmatpush.msrb.mxu3 %v394_v24  ;;  %v480_v24 = vld [vmem:[%s1623_s5 + $0x88] sm:$0xff] }
  0x69   :  { %354 = vmatpush.msrb.mxu2 %v215_v52 }
  0x6b   :  { %355 = vmatpush.msrb.mxu2 %v213_v53 }
  0x6d   :  { %356 = vmatpush.msrb.mxu2 %v211_v55 }
  0x6f   :  { %357 = vmatpush.msrb.mxu2 %v209_v56 }
  0x70   :  { %358 = vmatmul.f32.vlgmr.msrb.gmra.mxu2 %v170_v54 }
  0xbc   :  { %v259_v60 = vpop.f32.mrf.mxu1 }
  0xbd   :  { %v260_v62 = vadd.f32 %v259_v60, %v240_v58 }
  0xbe   :  { %v205_v61 = vpop.f32.mrf.mxu0 }
  0xbf   :  { %v206_v63 = vadd.f32 %v205_v61, %v187_v59  ;;  %v410_v59 = vperm.slane %v1406_v57, 2 }
  0xc1   :  { %v362_v0 = vmul.f32 %v260_v62, %v206_v63 }
  0xc3   :  { %363 = vadd.xlane.f32.xlu0 %v362_v0  ;;  %v493_v0 = vld [vmem:[%s1623_s5 + $0xf0] sm:$0xff] }
  0xc4   :  { %v299_v1 = vpop.f32.mrf.mxu3  ;;  %497 = vmatpush.msra.mxu0 %v493_v0 }
  0xc5   :  { %v300_v2 = vadd.f32 %v299_v1, %v240_v58  ;;  %v494_v1 = vld [vmem:[%s1623_s5 + $0xf8] sm:$0xff] }
  0xc6   :  { %517 = vmatpush.msra.mxu1 %v494_v1  ;;  %v544_v1 = vld [vmem:[%s1624_s6 + $0x28] sm:$0xff] }
  0xc7   :  { %v366_v3 = vmul.f32 %v300_v2, %v206_v63  ;;  %v491_v2 = vld [vmem:[%s1623_s5 + $0xe0] sm:$0xff] }
  0xc8   :  { %498 = vmatpush.msra.mxu0 %v491_v2 }
  0xca   :  { %499 = vmatpush.msra.mxu0 %v489_v13 }
  0xcb   :  { %367 = vadd.xlane.f32.xlu0 %v366_v3 }
  0xcc   :  { %500 = vmatpush.msra.mxu0 %v487_v15  ;;  %v557_v15 = vld [vmem:[%s1624_s6 + $0x90] sm:$0xff] }
  0xce   :  { %501 = vmatpush.msra.mxu0 %v485_v17  ;;  %v539_v17 = vld [vmem:[%s1624_s6] sm:$0xff] }
  0xd0   :  { %502 = vmatpush.msra.mxu0 %v483_v19  ;;  %v495_v19 = vperm.slane %v1406_v57, 5 }
  0xd2   :  { %503 = vmatpush.msra.mxu0 %v481_v21 }
  0xd4   :  { %v279_v38 = vpop.f32.mrf.mxu2 }
  0xd5   :  { %v280_v42 = vadd.f32 %v279_v38, %v241_v40  ;;  %v468_v38 = vld [vmem:[%s1623_s5 + $0x28] sm:$0xff] }
  0xdc   :  { %v339_v4 = vpop.f32.mrf.mxu1 }
  0xdd   :  { %v340_v5 = vadd.f32 %v339_v4, %v240_v58 }
  0xde   :  { %v319_v41 = vpop.f32.mrf.mxu0 }
  0xdf   :  { %v370_v6 = vmul.f32 %v340_v5, %v206_v63  ;;  %v320_v43 = vadd.f32 %v319_v41, %v241_v40  ;;  %v1123_v63 = vmov 128.0   ;;  %v463_v41 = vld [vmem:[%s1623_s5] sm:$0xff] }
  0xe1   :  { %371 = vadd.xlane.f32.xlu1 %v370_v6 }
  0xf3   :  { %v359_v47 = vpop.f32.mrf.mxu2 }
  0xf4   :  { %v360_v52 = vadd.f32 %v359_v47, %v241_v40  ;;  %v466_v40 = vld [vmem:[%s1623_s5 + $0x18] sm:$0xff] }
  0xf5   :  { %v562_v47 = vld [vmem:[%s1624_s6 + $0xb8] sm:$0xff] }
  0xf6   :  { %596 = vmatpush.msra.mxu3 %v562_v47  ;;  %v656_v47 = vld [vmem:[#allocation10 + $0xb8] sm:$0xff] }
 0x136   :  { %v364_v16 = vpop.xlane.xlu0 %363 }
 0x137   :  { %v365_v25 = vmul.f32 0.088388346, %v364_v16  ;;  %v488_v16 = vld [vmem:[%s1623_s5 + $0xc8] sm:$0xff] }
 0x13e   :  { %v368_v23 = vpop.xlane.xlu0 %367 }
 0x13f   :  { %v369_v26 = vmul.f32 0.088388346, %v368_v23  ;;  %v479_v23 = vld [vmem:[%s1623_s5 + $0x80] sm:$0xff] }
 0x140   :  { %504 = vmatpush.msra.mxu0 %v479_v23 }
 0x141   :  { %v374_v28 = vmax.f32 %v365_v25, %v369_v26 }
 0x154   :  { %v372_v27 = vpop.xlane.xlu1 %371 }
 0x155   :  { %v373_v29 = vmul.f32 0.088388346, %v372_v27  ;;  %v475_v27 = vld [vmem:[%s1623_s5 + $0x60] sm:$0xff] }
 0x157   :  { %v375_v30 = vmax.f32 %v374_v28, %v373_v29  ;;  %v476_v28 = vld [vmem:[%s1623_s5 + $0x68] sm:$0xff] }
 0x159   :  { %v376_v31 = vsub.f32 %v365_v25, %v375_v30  ;;  %v379_v32 = vsub.f32 %v369_v26, %v375_v30  ;;  %v382_v33 = vsub.f32 %v373_v29, %v375_v30  ;;  %v477_v25 = vld [vmem:[%s1623_s5 + $0x70] sm:$0xff]  ;;  %v478_v26 = vld [vmem:[%s1623_s5 + $0x78] sm:$0xff] }
 0x15a   :  { %505 = vmatpush.msra.mxu0 %v477_v25  ;;  %v473_v29 = vld [vmem:[%s1623_s5 + $0x50] sm:$0xff]  ;;  %v474_v30 = vld [vmem:[%s1623_s5 + $0x58] sm:$0xff] }
 0x15b   :  { %v377_v34 = vmul.f32 1.442695, %v376_v31  ;;  %v380_v35 = vmul.f32 1.442695, %v379_v32  ;;  %v383_v39 = vmul.f32 1.442695, %v382_v33 }
 0x15c   :  { %506 = vmatpush.msra.mxu0 %v475_v27  ;;  %v471_v31 = vld [vmem:[%s1623_s5 + $0x40] sm:$0xff]  ;;  %v472_v32 = vld [vmem:[%s1623_s5 + $0x48] sm:$0xff]  ;;  %v469_v33 = vld [vmem:[%s1623_s5 + $0x30] sm:$0xff]  ;;  %v563_v27 = vperm.slane %v1406_v57, 6 }
 0x15d   :  { %895 = vpow2.f32 %v377_v34  ;;  %v470_v34 = vld [vmem:[%s1623_s5 + $0x38] sm:$0xff] }
 0x15e   :  { %897 = vpow2.f32 %v380_v35  ;;  %507 = vmatpush.msra.mxu0 %v473_v29  ;;  %v467_v35 = vld [vmem:[%s1623_s5 + $0x20] sm:$0xff] }
 0x15f   :  { %899 = vpow2.f32 %v383_v39  ;;  %v465_v39 = vld [vmem:[%s1623_s5 + $0x10] sm:$0xff] }
 0x160   :  { %508 = vmatpush.msra.mxu0 %v471_v31 }
 0x162   :  { %509 = vmatpush.msra.mxu0 %v469_v33  ;;  %v663_v33 = vld [vmem:[#allocation10 + $0xf0] sm:$0xff] }
 0x163   :  { %v896_v44 = vpop.eup %895 }
 0x164   :  { %v898_v45 = vpop.eup %897  ;;  %v387_v49 = vmul.f32 %v896_v44, %v280_v42  ;;  %510 = vmatpush.msra.mxu0 %v467_v35  ;;  %v464_v42 = vld [vmem:[%s1623_s5 + $0x8] sm:$0xff] }
 0x165   :  { %v385_v46 = vadd.f32 %v898_v45, %v896_v44  ;;  %v900_v48 = vpop.eup %899  ;;  %v388_v50 = vmul.f32 %v898_v45, %v320_v43  ;;  %v554_v43 = vld [vmem:[%s1624_s6 + $0x78] sm:$0xff]  ;;  %v553_v44 = vld [vmem:[%s1624_s6 + $0x70] sm:$0xff]  ;;  %v552_v45 = vld [vmem:[%s1624_s6 + $0x68] sm:$0xff] }
 0x166   :  { %v390_v54 = vmul.f32 %v900_v48, %v360_v52  ;;  %511 = vmatpush.msra.mxu0 %v465_v39  ;;  %568 = vmatpush.msra.mxu2 %v554_v43  ;;  %v662_v35 = vld [vmem:[#allocation10 + $0xe8] sm:$0xff]  ;;  %v660_v43 = vld [vmem:[#allocation10 + $0xd8] sm:$0xff] }
 0x167   :  { %v386_v51 = vadd.f32 %v900_v48, %v385_v46  ;;  %v389_v53 = vadd.f32 %v388_v50, %v387_v49  ;;  %v561_v48 = vld [vmem:[%s1624_s6 + $0xb0] sm:$0xff]  ;;  %v551_v50 = vld [vmem:[%s1624_s6 + $0x60] sm:$0xff] }
 0x168   :  { %512 = vmatpush.msra.mxu0 %v463_v41  ;;  %569 = vmatpush.msra.mxu2 %v553_v44  ;;  %v657_v44 = vld [vmem:[#allocation10 + $0xc0] sm:$0xff] }
 0x169   :  { %901 = vrcp.f32 %v386_v51  ;;  %v391_v55 = vadd.f32 %v390_v54, %v389_v53  ;;  %v560_v51 = vld [vmem:[%s1624_s6 + $0xa8] sm:$0xff]  ;;  %v550_v53 = vld [vmem:[%s1624_s6 + $0x58] sm:$0xff]  ;;  %597 = vmatpush.msra.mxu3 %v561_v48  ;;  %v559_v54 = vld [vmem:[%s1624_s6 + $0xa0] sm:$0xff] }
 0x16a   :  { %903 = vrcp.f32 %v1123_v63  ;;  %570 = vmatpush.msra.mxu2 %v552_v45  ;;  %v545_v63 = vld [vmem:[%s1624_s6 + $0x30] sm:$0xff]  ;;  %v658_v45 = vld [vmem:[#allocation10 + $0xc8] sm:$0xff]  ;;  %v653_v48 = vld [vmem:[#allocation10 + $0xa0] sm:$0xff] }
 0x16b   :  { %598 = vmatpush.msra.mxu3 %v560_v51  ;;  %v652_v51 = vld [vmem:[#allocation10 + $0x98] sm:$0xff] }
 0x16c   :  { %571 = vmatpush.msra.mxu2 %v551_v50  ;;  %v651_v50 = vld [vmem:[#allocation10 + $0x90] sm:$0xff] }
 0x16d   :  { %599 = vmatpush.msra.mxu3 %v559_v54  ;;  %v647_v54 = vld [vmem:[#allocation10 + $0x70] sm:$0xff] }
 0x16e   :  { %572 = vmatpush.msra.mxu2 %v550_v53  ;;  %v650_v53 = vld [vmem:[#allocation10 + $0x88] sm:$0xff] }
 0x16f   :  { %v902_v56 = vpop.eup %901 }
 0x170   :  { %v393_v58 = vmul.f32 %v902_v56, %v391_v55  ;;  %v904_v3 = vpop.eup %903  ;;  %v549_v55 = vld [vmem:[%s1624_s6 + $0x50] sm:$0xff]  ;;  %v558_v56 = vld [vmem:[%s1624_s6 + $0x98] sm:$0xff] }
 0x171   :  { %v435_v4 = vmul.f32 128.0, %v904_v3  ;;  %vm439_vm0 = vweird.f32 %v904_v3  ;;  %573 = vmatpush.msra.mxu2 %v549_v55  ;;  %600 = vmatpush.msra.mxu3 %v558_v56  ;;  %v648_v55 = vld [vmem:[#allocation10 + $0x78] sm:$0xff]  ;;  %v645_v56 = vld [vmem:[#allocation10 + $0x60] sm:$0xff] }
 0x172   :  { %427 = vmatmul.f32.vlgmr.msrb.gmra.mxu3 %v393_v58  ;;  %v548_v58 = vld [vmem:[%s1624_s6 + $0x48] sm:$0xff] }
 0x173   :  { %v436_v5 = vsub.f32 1.0, %v435_v4  ;;  %574 = vmatpush.msra.mxu2 %v548_v58  ;;  %v542_v4 = vld [vmem:[%s1624_s6 + $0x18] sm:$0xff]  ;;  %601 = vmatpush.msra.mxu3 %v557_v15  ;;  %v646_v58 = vld [vmem:[#allocation10 + $0x68] sm:$0xff] }
 0x174   :  { %v740_v15 = vld [vmem:[#allocation11 + $0xf8] sm:$0xff] }
 0x175   :  { %v437_v6 = vmul.f32 %v904_v3, %v436_v5 }
 0x177   :  { %v438_v7 = vadd.f32 %v904_v3, %v437_v6  ;;  %v459_v6 = vperm.slane %v1406_v57, 3 }
 0x179   :  { %v1427_v8 = vsel %vm439_vm0, %v904_v3, %v438_v7 }
 0x1f5   :  { %v428_v60 = vpop.f32.mrf.mxu3 }
 0x1f6   :  { %v429_v61 = vadd.f32 %v428_v60, %v410_v59  ;;  %v547_v59 = vld [vmem:[%s1624_s6 + $0x40] sm:$0xff] }
 0x1f7   :  { %575 = vmatpush.msra.mxu2 %v547_v59  ;;  %v643_v59 = vld [vmem:[#allocation10 + $0x50] sm:$0xff] }
 0x1f8   :  { %v431_v62 = vadd.f32 %v429_v61, %v1318_v37  ;;  %v492_v37 = vld [vmem:[%s1623_s5 + $0xe8] sm:$0xff]  ;;  %v546_v61 = vld [vmem:[%s1624_s6 + $0x38] sm:$0xff] }
 0x1f9   :  { %518 = vmatpush.msra.mxu1 %v492_v37  ;;  %576 = vmatpush.msra.mxu2 %v546_v61  ;;  %v543_v37 = vld [vmem:[%s1624_s6 + $0x20] sm:$0xff] }
 0x1fa   :  { %432 = vadd.xlane.f32.xlu1 %v431_v62  ;;  %v641_v61 = vld [vmem:[#allocation10 + $0x40] sm:$0xff] }
 0x1fb   :  { %519 = vmatpush.msra.mxu1 %v490_v14  ;;  %577 = vmatpush.msra.mxu2 %v545_v63  ;;  %v541_v14 = vld [vmem:[%s1624_s6 + $0x10] sm:$0xff] }
 0x1fc   :  { %v639_v63 = vld [vmem:[#allocation10 + $0x30] sm:$0xff] }
 0x1fd   :  { %520 = vmatpush.msra.mxu1 %v488_v16  ;;  %578 = vmatpush.msra.mxu2 %v544_v1  ;;  %v556_v16 = vld [vmem:[%s1624_s6 + $0x88] sm:$0xff]  ;;  %v637_v1 = vld [vmem:[#allocation10 + $0x20] sm:$0xff] }
 0x1fe   :  { %602 = vmatpush.msra.mxu3 %v556_v16  ;;  %v737_v16 = vld [vmem:[#allocation11 + $0xe0] sm:$0xff] }
 0x1ff   :  { %521 = vmatpush.msra.mxu1 %v486_v18  ;;  %579 = vmatpush.msra.mxu2 %v543_v37  ;;  %v555_v18 = vld [vmem:[%s1624_s6 + $0x80] sm:$0xff]  ;;  %v635_v37 = vld [vmem:[#allocation10 + $0x10] sm:$0xff] }
 0x200   :  { %603 = vmatpush.msra.mxu3 %v555_v18  ;;  %v765_v18 = vld [vmem:[#allocation11 + $0x1c0] sm:$0xff] }
 0x201   :  { %522 = vmatpush.msra.mxu1 %v484_v20  ;;  %580 = vmatpush.msra.mxu2 %v542_v4  ;;  %v496_v20 = vperm.slane %v1410_v36, 5  ;;  %v661_v36 = vld [vmem:[#allocation10 + $0xe0] sm:$0xff] }
 0x202   :  { %667 = vmatpush.msrb.mxu3 %v663_v33  ;;  %v633_v4 = vld [vmem:[#allocation10] sm:$0xff] }
 0x203   :  { %523 = vmatpush.msra.mxu1 %v482_v22  ;;  %581 = vmatpush.msra.mxu2 %v541_v14  ;;  %v739_v14 = vld [vmem:[#allocation11 + $0xf0] sm:$0xff]  ;;  %v729_v33 = vld [vmem:[#allocation11 + $0xa0] sm:$0xff] }
 0x204   :  { %668 = vmatpush.msrb.mxu3 %v661_v36  ;;  %v757_v36 = vld [vmem:[#allocation11 + $0x180] sm:$0xff] }
 0x205   :  { %524 = vmatpush.msra.mxu1 %v480_v24 }
 0x207   :  { %525 = vmatpush.msra.mxu1 %v478_v26 }
 0x209   :  { %526 = vmatpush.msra.mxu1 %v476_v28 }
 0x20b   :  { %527 = vmatpush.msra.mxu1 %v474_v30 }
 0x20d   :  { %528 = vmatpush.msra.mxu1 %v472_v32 }
 0x20f   :  { %529 = vmatpush.msra.mxu1 %v470_v34  ;;  %v664_v34 = vld [vmem:[#allocation10 + $0xf8] sm:$0xff] }
 0x210   :  { %687 = vmatpush.msrb.mxu0 %v664_v34  ;;  %v730_v34 = vld [vmem:[#allocation11 + $0xa8] sm:$0xff] }
 0x211   :  { %530 = vmatpush.msra.mxu1 %v468_v38 }
 0x212   :  { %688 = vmatpush.msrb.mxu0 %v662_v35  ;;  %v758_v35 = vld [vmem:[#allocation11 + $0x188] sm:$0xff] }
 0x213   :  { %531 = vmatpush.msra.mxu1 %v466_v40 }
 0x214   :  { %689 = vmatpush.msrb.mxu0 %v660_v43  ;;  %v756_v43 = vld [vmem:[#allocation11 + $0x178] sm:$0xff] }
 0x215   :  { %532 = vmatpush.msra.mxu1 %v464_v42  ;;  %v659_v42 = vld [vmem:[#allocation10 + $0xd0] sm:$0xff] }
 0x216   :  { %669 = vmatpush.msrb.mxu3 %v659_v42  ;;  %690 = vmatpush.msrb.mxu0 %v658_v45  ;;  %v755_v42 = vld [vmem:[#allocation11 + $0x170] sm:$0xff]  ;;  %v725_v45 = vld [vmem:[#allocation11 + $0x80] sm:$0xff] }
 0x217   :  { %775 = vmatpush.msrb.mxu1 %v739_v14  ;;  %v715_v14 = vld [vmem:[#allocation11 + $0x30] sm:$0xff] }
 0x218   :  { %670 = vmatpush.msrb.mxu3 %v657_v44  ;;  %691 = vmatpush.msrb.mxu0 %v656_v47  ;;  %v753_v47 = vld [vmem:[#allocation11 + $0x160] sm:$0xff] }
 0x219   :  { %776 = vmatpush.msrb.mxu1 %v737_v16  ;;  %v742_v16 = vld [vmem:[#allocation11 + $0x108] sm:$0xff] }
 0x26d   :  { %v433_v9 = vpop.xlane.xlu1 %432 }
 0x26e   :  { %v441_v10 = vmul.f32 %v1427_v8, %v433_v9 }
 0x270   :  { %v1430_v11 = vsub.f32 %v431_v62, %v441_v10  ;;  %v461_v10 = vperm.slane %v1406_v57, 4 }
 0x272   :  { %v443_v12 = vmul.f32 %v1430_v11, %v1430_v11 }
 0x274   :  { %444 = vadd.xlane.f32.xlu2 %v443_v12 }
 0x2e7   :  { %v445_v46 = vpop.xlane.xlu2 %444 }
 0x2e8   :  { %v446_v49 = vmul.f32 %v445_v46, %v1427_v8  ;;  %v655_v46 = vld [vmem:[#allocation10 + $0xb0] sm:$0xff] }
 0x2e9   :  { %671 = vmatpush.msrb.mxu3 %v655_v46  ;;  %v726_v46 = vld [vmem:[#allocation11 + $0x88] sm:$0xff] }
 0x2ea   :  { %v447_v52 = vadd.f32 1e-05, %v446_v49  ;;  %v654_v49 = vld [vmem:[#allocation10 + $0xa8] sm:$0xff] }
 0x2eb   :  { %672 = vmatpush.msrb.mxu3 %v653_v48  ;;  %692 = vmatpush.msrb.mxu0 %v654_v49  ;;  %v754_v48 = vld [vmem:[#allocation11 + $0x168] sm:$0xff] }
 0x2ec   :  { %905 = vrsqrt.f32 %v447_v52  ;;  %vm454_vm2 = vweird.f32 %v447_v52 }
 0x2ed   :  { %673 = vmatpush.msrb.mxu3 %v651_v50  ;;  %693 = vmatpush.msrb.mxu0 %v652_v51  ;;  %v723_v50 = vld [vmem:[#allocation11 + $0x70] sm:$0xff]  ;;  %v724_v51 = vld [vmem:[#allocation11 + $0x78] sm:$0xff] }
 0x2ef   :  { %694 = vmatpush.msrb.mxu0 %v650_v53  ;;  %v752_v53 = vld [vmem:[#allocation11 + $0x158] sm:$0xff] }
 0x2f1   :  { %695 = vmatpush.msrb.mxu0 %v648_v55  ;;  %v721_v55 = vld [vmem:[#allocation11 + $0x60] sm:$0xff] }
 0x2f2   :  { %v906_v60 = vpop.eup %905 }
 0x2f3   :  { %v449_v62 = vmul.f32 %v906_v60, %v447_v52  ;;  %vm455_vm1 = vweird.f32 %v906_v60  ;;  %v649_v52 = vld [vmem:[#allocation10 + $0x80] sm:$0xff]  ;;  %696 = vmatpush.msrb.mxu0 %v646_v58 }
 0x2f4   :  { %vm456_vm3 = vmor %vm454_vm2, %vm455_vm1  ;;  %674 = vmatpush.msrb.mxu3 %v649_v52  ;;  %v751_v52 = vld [vmem:[#allocation11 + $0x150] sm:$0xff]  ;;  %v749_v58 = vld [vmem:[#allocation11 + $0x140] sm:$0xff] }
 0x2f5   :  { %v450_v0 = vmul.f32 %v906_v60, %v449_v62  ;;  %v642_v62 = vld [vmem:[#allocation10 + $0x48] sm:$0xff] }
 0x2f6   :  { %675 = vmatpush.msrb.mxu3 %v647_v54 }
 0x2f7   :  { %v451_v2 = vmul.f32 0.5, %v450_v0  ;;  %v640_v0 = vld [vmem:[#allocation10 + $0x38] sm:$0xff] }
 0x2f8   :  { %676 = vmatpush.msrb.mxu3 %v645_v56  ;;  %v722_v56 = vld [vmem:[#allocation11 + $0x68] sm:$0xff] }
 0x2f9   :  { %v452_v3 = vsub.f32 1.5, %v451_v2  ;;  %v638_v2 = vld [vmem:[#allocation10 + $0x28] sm:$0xff] }
 0x2fa   :  { %677 = vmatpush.msrb.mxu3 %v643_v59  ;;  %v750_v59 = vld [vmem:[#allocation11 + $0x148] sm:$0xff] }
 0x2fb   :  { %v453_v5 = vmul.f32 %v906_v60, %v452_v3  ;;  %v636_v3 = vld [vmem:[#allocation10 + $0x18] sm:$0xff] }
 0x2fc   :  { %678 = vmatpush.msrb.mxu3 %v641_v61  ;;  %v747_v61 = vld [vmem:[#allocation11 + $0x130] sm:$0xff] }
 0x2fd   :  { %v457_v7 = vsel %vm456_vm3, %v906_v60, %v453_v5  ;;  %v644_v60 = vld [vmem:[#allocation10 + $0x58] sm:$0xff]  ;;  %v634_v5 = vld [vmem:[#allocation10 + $0x8] sm:$0xff] }
 0x2fe   :  { %v458_v9 = vmul.f32 %v457_v7, %v1430_v11  ;;  %v540_v11 = vld [vmem:[%s1624_s6 + $0x8] sm:$0xff]  ;;  %697 = vmatpush.msrb.mxu0 %v644_v60  ;;  %679 = vmatpush.msrb.mxu3 %v639_v63  ;;  %v772_v7 = vld [vmem:[#allocation11 + $0x1f8] sm:$0xff]  ;;  %s1124_s6 = smov [#allocation14]  }
 0x2ff   :  { %582 = vmatpush.msra.mxu2 %v540_v11  ;;  %s862_s13 = sshll.u32 %s1124_s6, 4  ;;  %s863_s13 = int_to_ptr.vmem [resolvable:$true] %s862_s13 }
 0x300   :  { %v460_v12 = vmul.f32 %v459_v6, %v458_v9  ;;  %698 = vmatpush.msrb.mxu0 %v642_v62  ;;  %680 = vmatpush.msrb.mxu3 %v637_v1  ;;  %v771_v6 = vld [vmem:[#allocation11 + $0x1f0] sm:$0xff]  ;;  %v769_v9 = vld [vmem:[#allocation11 + $0x1e0] sm:$0xff]  ;;  %v748_v62 = vld [vmem:[#allocation11 + $0x138] sm:$0xff]  ;;  %v629_v1 = vperm.slane %v1406_v57, 7 }
 0x301   :  { %583 = vmatpush.msra.mxu2 %v539_v17  ;;  %v717_v57 = vld [vmem:[#allocation11 + $0x40] sm:$0xff] }
 0x302   :  { %v462_v13 = vadd.f32 %v461_v10, %v460_v12  ;;  %699 = vmatpush.msrb.mxu0 %v640_v0  ;;  %681 = vmatpush.msrb.mxu3 %v635_v37  ;;  %v770_v10 = vld [vmem:[#allocation11 + $0x1e8] sm:$0xff]  ;;  %v767_v12 = vld [vmem:[#allocation11 + $0x1d0] sm:$0xff] }
 0x303   :  { %795 = vmatpush.msrb.mxu2 %v771_v6  ;;  %v1608_v0 = vld [vmem:[#allocation13 + $0x10] sm:$0x7] }
 0x304   :  { %513 = vmatmul.f32.vlgmr.msra.gmra.mxu0 %v462_v13  ;;  %533 = vmatmul.f32.vlgmr.msra.gmra.mxu1 %v462_v13  ;;  %v719_v6 = vld [vmem:[#allocation11 + $0x50] sm:$0xff] }
 0x305   :  { %700 = vmatpush.msrb.mxu0 %v638_v2  ;;  %682 = vmatpush.msrb.mxu3 %v633_v4 }
 0x306   :  { %796 = vmatpush.msrb.mxu2 %v769_v9  ;;  %v720_v9 = vld [vmem:[#allocation11 + $0x58] sm:$0xff] }
 0x307   :  { %701 = vmatpush.msrb.mxu0 %v636_v3  ;;  %v631_v3 = vperm.slane %v1608_v0, 0 }
 0x308   :  { %797 = vmatpush.msrb.mxu2 %v767_v12  ;;  %v743_v12 = vld [vmem:[#allocation11 + $0x110] sm:$0xff] }
 0x309   :  { %702 = vmatpush.msrb.mxu0 %v634_v5 }
 0x30a   :  { %798 = vmatpush.msrb.mxu2 %v765_v18  ;;  %v714_v18 = vld [vmem:[#allocation11 + $0x28] sm:$0xff] }
 0x30b   :  { %835 = vmatpush.msra.mxu0 %v772_v7  ;;  %v745_v7 = vld [vmem:[#allocation11 + $0x120] sm:$0xff] }
 0x30d   :  { %836 = vmatpush.msra.mxu0 %v770_v10  ;;  %v746_v10 = vld [vmem:[#allocation11 + $0x128] sm:$0xff] }
 0x381   :  { %v514_v21 = vpop.f32.mrf.mxu0  ;;  %v534_v22 = vpop.f32.mrf.mxu1 }
 0x382   :  { %v515_v23 = vadd.f32 %v514_v21, %v495_v19  ;;  %v535_v24 = vadd.f32 %v534_v22, %v496_v20  ;;  %v766_v19 = vld [vmem:[#allocation11 + $0x1c8] sm:$0xff]  ;;  %v735_v21 = vld [vmem:[#allocation11 + $0xd0] sm:$0xff]  ;;  %v736_v22 = vld [vmem:[#allocation11 + $0xd8] sm:$0xff] }
 0x383   :  { %v738_v20 = vld [vmem:[#allocation11 + $0xe8] sm:$0xff]  ;;  %777 = vmatpush.msrb.mxu1 %v735_v21  ;;  %v709_v21 = vld [vmem:[#allocation11] sm:$0xff] }
 0x384   :  { %v537_v25 = vmax.f32 %v515_v23, 0.0  ;;  %v538_v26 = vmax.f32 %v535_v24, 0.0  ;;  %v763_v24 = vld [vmem:[#allocation11 + $0x1b0] sm:$0xff] }
 0x385   :  { %799 = vmatpush.msrb.mxu2 %v763_v24 }
 0x386   :  { %584 = vmatmul.f32.vlgmr.msra.gmra.mxu2 %v537_v25  ;;  %877 = vmatmul.msk.f32.vlgmr.msra.gmra.mxu3 %vm564_vm4, %v538_v26  ;;  %v764_v25 = vld [vmem:[#allocation11 + $0x1b8] sm:$0xff]  ;;  %v733_v26 = vld [vmem:[#allocation11 + $0xc0] sm:$0xff] }
 0x387   :  { %815 = vmatpush.msra.mxu3 %v740_v15  ;;  %778 = vmatpush.msrb.mxu1 %v733_v26  ;;  %v741_v15 = vld [vmem:[#allocation11 + $0x100] sm:$0xff] }
 0x389   :  { %816 = vmatpush.msra.mxu3 %v738_v20  ;;  %v712_v20 = vld [vmem:[#allocation11 + $0x18] sm:$0xff] }
 0x38b   :  { %817 = vmatpush.msra.mxu3 %v736_v22  ;;  %v710_v22 = vld [vmem:[#allocation11 + $0x8] sm:$0xff] }
 0x409   :  { %v585_v28 = vpop.f32.mrf.mxu2  ;;  %v605_v30 = vpop.f32.mrf.mxu3 }
 0x40a   :  { %v586_v29 = vadd.f32 %v585_v28, %v563_v27  ;;  %v734_v27 = vld [vmem:[#allocation11 + $0xc8] sm:$0xff] }
 0x40b   :  { %v762_v28 = vld [vmem:[#allocation11 + $0x1a8] sm:$0xff]  ;;  %818 = vmatpush.msra.mxu3 %v734_v27 }
 0x40c   :  { %v606_v31 = vadd.f32 %v605_v30, %v586_v29  ;;  %v731_v29 = vld [vmem:[#allocation11 + $0xb0] sm:$0xff]  ;;  %v732_v30 = vld [vmem:[#allocation11 + $0xb8] sm:$0xff] }
 0x40d   :  { %779 = vmatpush.msrb.mxu1 %v731_v29  ;;  %819 = vmatpush.msra.mxu3 %v732_v30 }
 0x40e   :  { %v608_v32 = vadd.f32 %v606_v31, %v462_v13  ;;  %v768_v13 = vld [vmem:[#allocation11 + $0x1d8] sm:$0xff]  ;;  %v759_v31 = vld [vmem:[#allocation11 + $0x190] sm:$0xff] }
 0x40f   :  { %837 = vmatpush.msra.mxu0 %v768_v13  ;;  %780 = vmatpush.msrb.mxu1 %v729_v33  ;;  %v718_v13 = vld [vmem:[#allocation11 + $0x48] sm:$0xff] }
 0x410   :  { %609 = vadd.xlane.f32.xlu2 %v608_v32  ;;  %820 = vmatpush.msra.mxu3 %v730_v34 }
 0x411   :  { %838 = vmatpush.msra.mxu0 %v766_v19  ;;  %v711_v19 = vld [vmem:[#allocation11 + $0x10] sm:$0xff] }
 0x413   :  { %839 = vmatpush.msra.mxu0 %v764_v25 }
 0x415   :  { %840 = vmatpush.msra.mxu0 %v762_v28 }
 0x483   :  { %v610_v38 = vpop.xlane.xlu2 %609 }
 0x484   :  { %v611_v39 = vmul.f32 %v610_v38, %v1427_v8  ;;  %v727_v38 = vld [vmem:[#allocation11 + $0x90] sm:$0xff] }
 0x485   :  { %781 = vmatpush.msrb.mxu1 %v727_v38 }
 0x486   :  { %v1598_v40 = vsub.f32 %v608_v32, %v611_v39  ;;  %v760_v32 = vld [vmem:[#allocation11 + $0x198] sm:$0xff] }
 0x487   :  { %841 = vmatpush.msra.mxu0 %v760_v32  ;;  %v728_v39 = vld [vmem:[#allocation11 + $0x98] sm:$0xff]  ;;  %782 = vmatpush.msrb.mxu1 %v725_v45 }
 0x488   :  { %v613_v41 = vmul.f32 %v1598_v40, %v1598_v40  ;;  %821 = vmatpush.msra.mxu3 %v728_v39 }
 0x489   :  { %842 = vmatpush.msra.mxu0 %v758_v35  ;;  %783 = vmatpush.msrb.mxu1 %v723_v50 }
 0x48a   :  { %614 = vadd.xlane.f32.xlu0 %v613_v41  ;;  %822 = vmatpush.msra.mxu3 %v726_v46 }
 0x48b   :  { %843 = vmatpush.msra.mxu0 %v756_v43  ;;  %784 = vmatpush.msrb.mxu1 %v721_v55 }
 0x48c   :  { %823 = vmatpush.msra.mxu3 %v724_v51 }
 0x48d   :  { %844 = vmatpush.msra.mxu0 %v754_v48  ;;  %785 = vmatpush.msrb.mxu1 %v719_v6 }
 0x48e   :  { %824 = vmatpush.msra.mxu3 %v722_v56 }
 0x48f   :  { %845 = vmatpush.msra.mxu0 %v752_v53  ;;  %786 = vmatpush.msrb.mxu1 %v717_v57 }
 0x490   :  { %825 = vmatpush.msra.mxu3 %v720_v9 }
 0x491   :  { %846 = vmatpush.msra.mxu0 %v750_v59  ;;  %787 = vmatpush.msrb.mxu1 %v715_v14 }
 0x492   :  { %826 = vmatpush.msra.mxu3 %v718_v13 }
 0x493   :  { %847 = vmatpush.msra.mxu0 %v748_v62 }
 0x495   :  { %848 = vmatpush.msra.mxu0 %v746_v10 }
 0x4fd   :  { %v615_v11 = vpop.xlane.xlu0 %614 }
 0x4fe   :  { %v616_v17 = vmul.f32 %v615_v11, %v1427_v8  ;;  %v761_v8 = vld [vmem:[#allocation11 + $0x1a0] sm:$0xff]  ;;  %v716_v11 = vld [vmem:[#allocation11 + $0x38] sm:$0xff] }
 0x4ff   :  { %800 = vmatpush.msrb.mxu2 %v761_v8  ;;  %827 = vmatpush.msra.mxu3 %v716_v11  ;;  %v665_v8 = vperm.slane %v1608_v0, 1 }
 0x500   :  { %v1603_v23 = vadd.f32 1e-05, %v616_v17  ;;  %v713_v17 = vld [vmem:[#allocation11 + $0x20] sm:$0xff] }
 0x501   :  { %801 = vmatpush.msrb.mxu2 %v759_v31  ;;  %788 = vmatpush.msrb.mxu1 %v713_v17  ;;  %v773_v31 = vperm.slane %v1608_v0, 2 }
 0x502   :  { %907 = vrsqrt.f32 %v1603_v23  ;;  %vm624_vm6 = vweird.f32 %v1603_v23  ;;  %828 = vmatpush.msra.mxu3 %v714_v18 }
 0x503   :  { %802 = vmatpush.msrb.mxu2 %v757_v36  ;;  %789 = vmatpush.msrb.mxu1 %v711_v19 }
 0x504   :  { %829 = vmatpush.msra.mxu3 %v712_v20 }
 0x505   :  { %803 = vmatpush.msrb.mxu2 %v755_v42  ;;  %790 = vmatpush.msrb.mxu1 %v709_v21 }
 0x506   :  { %830 = vmatpush.msra.mxu3 %v710_v22 }
 0x507   :  { %804 = vmatpush.msrb.mxu2 %v753_v47 }
 0x508   :  { %v908_v41 = vpop.eup %907 }
 0x509   :  { %v619_v44 = vmul.f32 %v908_v41, %v1603_v23  ;;  %vm625_vm5 = vweird.f32 %v908_v41  ;;  %805 = vmatpush.msrb.mxu2 %v751_v52  ;;  %v148_v23 = vld [vmem:[#allocation13 + $0x18] sm:$0x7] }
 0x50a   :  { %vm626_vm7 = vmor %vm624_vm6, %vm625_vm5  ;;  %v666_v24 = vperm.slane %v148_v23, 1  ;;  %v774_v35 = vperm.slane %v148_v23, 2 }
 0x50b   :  { %v620_v49 = vmul.f32 %v908_v41, %v619_v44  ;;  %806 = vmatpush.msrb.mxu2 %v749_v58 }
 0x50d   :  { %v621_v54 = vmul.f32 0.5, %v620_v49  ;;  %807 = vmatpush.msrb.mxu2 %v747_v61 }
 0x50f   :  { %v622_v60 = vsub.f32 1.5, %v621_v54  ;;  %808 = vmatpush.msrb.mxu2 %v745_v7 }
 0x511   :  { %v623_v63 = vmul.f32 %v908_v41, %v622_v60  ;;  %809 = vmatpush.msrb.mxu2 %v743_v12 }
 0x513   :  { %v627_v2 = vsel %vm626_vm7, %v908_v41, %v623_v63  ;;  %810 = vmatpush.msrb.mxu2 %v741_v15 }
 0x514   :  { %v628_v37 = vmul.f32 %v627_v2, %v1598_v40  ;;  %v744_v40 = vld [vmem:[#allocation11 + $0x118] sm:$0xff] }
 0x515   :  { %849 = vmatpush.msra.mxu0 %v744_v40 }
 0x516   :  { %v630_v4 = vmul.f32 %v629_v1, %v628_v37 }
 0x517   :  { %850 = vmatpush.msra.mxu0 %v742_v16 }
 0x518   :  { %v632_v5 = vadd.f32 %v631_v3, %v630_v4 }
 0x51a   :  { %683 = vmatmul.f32.vlgmr.msrb.gmra.mxu3 %v632_v5  ;;  %703 = vmatmul.f32.vlgmr.msrb.gmra.mxu0 %v632_v5 }
 0x597   :  { %v704_v25 = vpop.f32.mrf.mxu0 }
 0x598   :  { %v705_v26 = vadd.f32 %v704_v25, %v666_v24 }
 0x59a   :  { %v708_v27 = vmax.f32 %v705_v26, 0.0 }
 0x59c   :  { %811 = vmatmul.f32.vlgmr.msrb.gmra.mxu2 %v708_v27  ;;  %851 = vmatmul.f32.vlgmr.msra.gmra.mxu0 %v708_v27 }
 0x59d   :  { %v684_v28 = vpop.f32.mrf.mxu3 }
 0x59e   :  { %v685_v29 = vadd.f32 %v684_v28, %v665_v8 }
 0x5a0   :  { %v707_v30 = vmax.f32 %v685_v29, 0.0 }
 0x5a2   :  { %791 = vmatmul.f32.vlgmr.msrb.gmra.mxu1 %v707_v30  ;;  %831 = vmatmul.f32.vlgmr.msra.gmra.mxu3 %v707_v30 }
 0x619   :  { %v852_v41 = vpop.f32.mrf.mxu0 }
 0x61f   :  { %v792_v32 = vpop.f32.mrf.mxu1  ;;  %v812_v34 = vpop.f32.mrf.mxu2 }
 0x620   :  { %v793_v33 = vadd.f32 %v792_v32, %v773_v31 }
 0x622   :  { %v813_v36 = vadd.f32 %v812_v34, %v793_v33 }
 0x624   :  { %855 = vst [vmem:[#allocation14] sm:$0xff] %v813_v36 }
 0x625   :  { %v832_v38 = vpop.f32.mrf.mxu3 }
 0x626   :  { %v833_v39 = vadd.f32 %v832_v38, %v774_v35 }
 0x628   :  { %v853_v42 = vadd.f32 %v852_v41, %v833_v39 }
 0x62a   :  { %856 = vst [vmem:[#allocation14 + $0x8] sm:$0xff] %v853_v42 }
 0x62b   :  { %867 = dma.vmem_to_hbm [thread:$0]  %s863_s13, 256, %s865_s14, [#allocation4]  }
 0x62c   :  { %1109 = dma.done.wait [#allocation4], 256  }
 0x62d   :  { %1110 = vsyncadd [#allocation4], 4294967040 }
 0x62e   :  { %872 = vsyncpa [#allocation3], 1 }
 0x62f   :  { %873 = vsyncpa [#allocation6], 1 }
 0x630   :  { %874 = vsyncpa [#allocation9], 1 }
 0x631   :  { %875 = vsyncpa [#allocation12], 1 }
 0x632   :  { %876 = vsyncpa [#allocation4], 1 }

</bundles_post_ra>
